<compile_context>
chip_gen: v6e
topology: v6e:2x2x1
jax: 0.10.0
libtpu: 0.0.40
codegen_flags: <defaults>
</compile_context>

<pallas_src>
import jax
import jax.numpy as jnp
from jax.experimental import pallas as pl
from jax.experimental.pallas import tpu as pltpu

LANE = 128  # all feature dims are zero-padded to this many lanes


def sage_conv_kernel(a_ref, xk_ref, xm_ref, inv_ref, w_ref, b_ref, out_ref, acc_ref):
    """One fused SAGEConv layer, one (row-tile, k-tile) grid step.

    a_ref   : (tm, tk)       bf16  raw edge-count tile (rows = dst, cols = src)
    xk_ref  : (tk, fin)      bf16  neighbor features for this K tile
    xm_ref  : (tm, fin)      bf16  root ("self") features for this row tile
    inv_ref : (tm, 1)        f32   1 / in_degree (clamped to >= 1)
    w_ref   : (2*fin, fout)  bf16  stacked [W_l ; W_r]
    b_ref   : (1, fout)      f32   bias
    out_ref : (tm, fout)           layer output (bf16 layer 1, f32 layer 2)
    acc_ref : (tm, 2*fin)    f32   [partial neighbor sum | root features]
    """
    k = pl.program_id(1)
    tm, fin = xm_ref.shape

    @pl.when(k == 0)
    def _init():
        acc_ref[:, :fin] = jnp.zeros((tm, fin), jnp.float32)
        acc_ref[:, fin:] = xm_ref[...].astype(jnp.float32)

    # Partial neighbor SUM: bf16 x bf16 on the MXU, f32 accumulation in VMEM.
    acc_ref[:, :fin] += jnp.dot(
        a_ref[...], xk_ref[...], preferred_element_type=jnp.float32)

    @pl.when(k == pl.num_programs(1) - 1)
    def _finalize():
        # Mean = sum * (1/deg): exact f32 row scale (A carries integer counts).
        acc_ref[:, :fin] = acc_ref[:, :fin] * inv_ref[...]
        # Fused lin_l / lin_r: single K=2*fin MXU pass, no concatenate temp.
        z = acc_ref[...].astype(jnp.bfloat16)
        y = jnp.dot(z, w_ref[...], preferred_element_type=jnp.float32)
        y = y + b_ref[...]
        # F.dropout(p=0.0) is the identity; ReLU follows both conv layers.
        out_ref[...] = jnp.maximum(y, 0.0).astype(out_ref.dtype)


def _row_tile(n):
    """Row (node) tile: as large as possible, but keep >= 2 row tiles so the
    'parallel' axis still shards across v7x's two TensorCores."""
    for t in (1024, 512, 256, 128):
        if n % t == 0 and n // t >= 2:
            return t
    return n


def _k_tile(n):
    """Reduction (neighbor-column) tile."""
    for t in (512, 256, 128):
        if n % t == 0:
            return t
    return n


def sage_conv(a_cnt, x, inv_deg, w_stack, b, *, tm, tk, out_dtype):
    """relu(mean_agg(A, x) @ W_l + x @ W_r + b) via a tiled Pallas kernel."""
    n, fin = x.shape
    fout = w_stack.shape[1]
    assert n % tm == 0 and n % tk == 0, "tile sizes must divide num_nodes"
    grid = (n // tm, n // tk)
    return pl.pallas_call(
        sage_conv_kernel,
        out_shape=jax.ShapeDtypeStruct((n, fout), out_dtype),
        grid_spec=pltpu.PrefetchScalarGridSpec(
            num_scalar_prefetch=0,
            grid=grid,
            in_specs=[
                pl.BlockSpec((tm, tk), lambda i, k: (i, k)),          # A counts
                pl.BlockSpec((tk, fin), lambda i, k: (k, 0)),         # neighbor feats
                pl.BlockSpec((tm, fin), lambda i, k: (i, 0)),         # root feats
                pl.BlockSpec((tm, 1), lambda i, k: (i, 0)),           # 1/deg
                pl.BlockSpec((2 * fin, fout), lambda i, k: (0, 0)),   # [W_l ; W_r]
                pl.BlockSpec((1, fout), lambda i, k: (0, 0)),         # bias
            ],
            out_specs=pl.BlockSpec((tm, fout), lambda i, k: (i, 0)),
            scratch_shapes=[pltpu.VMEM((tm, 2 * fin), jnp.float32)],
        ),
        compiler_params=pltpu.CompilerParams(
            dimension_semantics=("parallel", "arbitrary")),
    )(a_cnt, x, x, inv_deg, w_stack, b)


def build_graph_operands(edge_index, num_nodes):
    """Edge counts (bf16, exact small integers) + f32 reciprocal in-degree.

    Built directly in their streamed dtypes — no extra N^2 f32 passes.
    """
    src, dst = edge_index[0], edge_index[1]
    counts = jnp.zeros((num_nodes, num_nodes), jnp.bfloat16).at[dst, src].add(1.0)
    deg = jnp.zeros((num_nodes,), jnp.float32).at[dst].add(1.0)
    inv_deg = (1.0 / jnp.maximum(deg, 1.0)).reshape(num_nodes, 1)
    return counts, inv_deg


def _pad_to(arr, rows=None, cols=None):
    r = 0 if rows is None else rows - arr.shape[0]
    c = 0 if cols is None else cols - arr.shape[1]
    return jnp.pad(arr, ((0, r), (0, c)))


def prepare_params(params, pad=LANE):
    """Zero-pad feature dims to `pad` lanes, stack [W_l ; W_r], bf16 weights."""
    w1 = jnp.concatenate([_pad_to(params["w1l"], pad, pad),
                          _pad_to(params["w1r"], pad, pad)], axis=0)
    w2 = jnp.concatenate([_pad_to(params["w2l"], pad, pad),
                          _pad_to(params["w2r"], pad, pad)], axis=0)
    b1 = _pad_to(params["b1"], None, pad)
    b2 = _pad_to(params["b2"], None, pad)
    return w1.astype(jnp.bfloat16), b1, w2.astype(jnp.bfloat16), b2


def sage_forward(x, edge_index, params, *, out_dim=64):
    n = x.shape[0]
    counts, inv_deg = build_graph_operands(edge_index, n)   # O(N^2) operand: bf16
    w1, b1, w2, b2 = prepare_params(params)
    x_pad = _pad_to(x, None, LANE).astype(jnp.bfloat16)     # bf16 feature stream
    tm, tk = _row_tile(n), _k_tile(n)
    h = sage_conv(counts, x_pad, inv_deg, w1, b1, tm=tm, tk=tk,
                  out_dtype=jnp.bfloat16)                    # (N, 128) ReLU'd bf16
    y = sage_conv(counts, h, inv_deg, w2, b2, tm=tm, tk=tk,
                  out_dtype=jnp.float32)                     # (N, 128) ReLU'd f32
    return y[:, :out_dim]


def init_params(key, in_dim=64, hidden=32, out_dim=64):
    ks = jax.random.split(key, 6)
    s1 = 1.0 / jnp.sqrt(in_dim)
    s2 = 1.0 / jnp.sqrt(hidden)
    return {
        # stored as (in, out) so the kernel does x @ W directly
        "w1l": jax.random.uniform(ks[0], (in_dim, hidden), jnp.float32, -s1, s1),
        "w1r": jax.random.uniform(ks[1], (in_dim, hidden), jnp.float32, -s1, s1),
        "b1":  jax.random.uniform(ks[2], (1, hidden), jnp.float32, -s1, s1),
        "w2l": jax.random.uniform(ks[3], (hidden, out_dim), jnp.float32, -s2, s2),
        "w2r": jax.random.uniform(ks[4], (hidden, out_dim), jnp.float32, -s2, s2),
        "b2":  jax.random.uniform(ks[5], (1, out_dim), jnp.float32, -s2, s2),
    }


if __name__ == "__main__":
    key = jax.random.PRNGKey(0)
    k_x, k_e, k_p = jax.random.split(key, 3)

    num_nodes, num_edges = 512, 2048          # grid = (2, 1): tm=256, tk=512
    in_dim, hidden, out_dim = 64, 32, 64

    x = jax.random.normal(k_x, (num_nodes, in_dim), jnp.float32)
    edge_index = jax.random.randint(k_e, (2, num_edges), 0, num_nodes, jnp.int32)
    params = init_params(k_p, in_dim, hidden, out_dim)

    out = jax.block_until_ready(jax.jit(sage_forward)(x, edge_index, params))

    # f32 reference (dense, un-padded, un-fused).  The kernel streams x / h and
    # the epilogue weights in bf16, so the tolerance is loose but meaningful.
    counts_ref, inv_deg_ref = build_graph_operands(edge_index, num_nodes)
    a = counts_ref.astype(jnp.float32) * inv_deg_ref
    h_ref = jnp.maximum((a @ x) @ params["w1l"] + x @ params["w1r"] + params["b1"], 0.0)
    y_ref = jnp.maximum((a @ h_ref) @ params["w2l"] + h_ref @ params["w2r"] + params["b2"], 0.0)

    assert out.shape == (num_nodes, out_dim)
    assert bool(jnp.all(out >= 0.0))          # trailing ReLU per the module
    err = float(jnp.max(jnp.abs(out - y_ref)))
    assert err < 1e-1, f"max abs error vs f32 reference: {err}"
    print("KERNEL_OK")
</pallas_src>

<mosaic_0001>
module attributes {stable_mosaic.version = 11 : i64} {
  func.func private @main(%arg0: i32) attributes {dimension_semantics = [#tpu.dimension_semantics<core_parallel>], iteration_bounds = array<i64: 2>, tpu.core_type = #tpu.core_type<sc_scalar_subcore>, window_params = []} {
    return
  }
}

module attributes {stable_mosaic.version = 11 : i64} {
  func.func private @main(%arg0: i32) attributes {dimension_semantics = [#tpu.dimension_semantics<core_parallel>], iteration_bounds = array<i64: 2>, tpu.core_type = #tpu.core_type<sc_scalar_subcore>, window_params = []} {
    return
  }
}

module attributes {stable_mosaic.version = 11 : i64} {
  func.func @sage_conv_kernel(%arg0: i32, %arg1: i32, %arg2: memref<256x512xbf16, #tpu.memory_space<vmem>>, %arg3: memref<512x128xbf16, #tpu.memory_space<vmem>>, %arg4: memref<256x128xbf16, #tpu.memory_space<vmem>>, %arg5: memref<256x1xf32, #tpu.memory_space<vmem>>, %arg6: memref<256x128xbf16, #tpu.memory_space<vmem>>, %arg7: memref<1x128xf32, #tpu.memory_space<vmem>>, %arg8: memref<256x128xf32, #tpu.memory_space<vmem>>, %arg9: memref<256x256xf32, #tpu.memory_space<vmem>>) attributes {dimension_semantics = [#tpu.dimension_semantics<parallel>, #tpu.dimension_semantics<arbitrary>], iteration_bounds = array<i64: 2, 1>, scalar_prefetch = 0 : i64, scratch_operands = 1 : i64, tpu.core_type = #tpu.core_type<tc>, window_params = [{transform_indices = @transform_0, window_bounds = array<i64: 256, 512>}, {transform_indices = @transform_1, window_bounds = array<i64: 512, 128>}, {transform_indices = @transform_2, window_bounds = array<i64: 256, 128>}, {transform_indices = @transform_3, window_bounds = array<i64: 256, 1>}, {pipeline_mode = #tpu.pipeline_mode<synchronous>, transform_indices = @transform_4, window_bounds = array<i64: 256, 128>}, {pipeline_mode = #tpu.pipeline_mode<synchronous>, transform_indices = @transform_5, window_bounds = array<i64: 1, 128>}, {transform_indices = @transform_6, window_bounds = array<i64: 256, 128>}]} {
    %c0_i32 = arith.constant 0 : i32
    %0 = arith.cmpi eq, %arg1, %c0_i32 : i32
    %1 = arith.extui %0 : i1 to i32
    %c0_i32_0 = arith.constant 0 : i32
    %2 = arith.cmpi ne, %1, %c0_i32_0 : i32
    scf.if %2 {
      %cst_10 = arith.constant 0.000000e+00 : f32
      %12 = vector.broadcast %cst_10 : f32 to vector<256x128xf32>
      %c0_11 = arith.constant 0 : index
      %c0_12 = arith.constant 0 : index
      %13 = vector.load %arg9[%c0_11, %c0_12] : memref<256x256xf32, #tpu.memory_space<vmem>>, vector<256x128xf32>
      tpu.vector_store %arg9[%c0_11, %c0_12], %12 {strides = array<i32>} : memref<256x256xf32, #tpu.memory_space<vmem>>, vector<256x128xf32>,
      %c0_13 = arith.constant 0 : index
      %c0_14 = arith.constant 0 : index
      %14 = vector.load %arg4[%c0_13, %c0_14] : memref<256x128xbf16, #tpu.memory_space<vmem>>, vector<256x128xbf16>
      %15 = arith.extf %14 : vector<256x128xbf16> to vector<256x128xf32>
      %c0_15 = arith.constant 0 : index
      %c128 = arith.constant 128 : index
      %16 = vector.load %arg9[%c0_15, %c128] : memref<256x256xf32, #tpu.memory_space<vmem>>, vector<256x128xf32>
      tpu.vector_store %arg9[%c0_15, %c128], %15 {strides = array<i32>} : memref<256x256xf32, #tpu.memory_space<vmem>>, vector<256x128xf32>,
    } else {
    }
    %c0 = arith.constant 0 : index
    %c0_1 = arith.constant 0 : index
    %3 = vector.load %arg9[%c0, %c0_1] : memref<256x256xf32, #tpu.memory_space<vmem>>, vector<256x128xf32>
    %c0_2 = arith.constant 0 : index
    %c0_3 = arith.constant 0 : index
    %4 = vector.load %arg2[%c0_2, %c0_3] : memref<256x512xbf16, #tpu.memory_space<vmem>>, vector<256x512xbf16>
    %c0_4 = arith.constant 0 : index
    %c0_5 = arith.constant 0 : index
    %5 = vector.load %arg3[%c0_4, %c0_5] : memref<512x128xbf16, #tpu.memory_space<vmem>>, vector<512x128xbf16>
    %cst = arith.constant dense<0.000000e+00> : vector<256x128xf32>
    %6 = tpu.matmul %4, %5, %cst {dimension_numbers = #tpu.dot_dimension_numbers<[1], [0], [0], [1], [0, 0, 1, 1], [], []>} : vector<256x512xbf16>, vector<512x128xbf16>, vector<256x128xf32> -> vector<256x128xf32>
    %7 = arith.addf %3, %6 : vector<256x128xf32>
    %c0_6 = arith.constant 0 : index
    %c0_7 = arith.constant 0 : index
    %8 = vector.load %arg9[%c0_6, %c0_7] : memref<256x256xf32, #tpu.memory_space<vmem>>, vector<256x128xf32>
    tpu.vector_store %arg9[%c0_6, %c0_7], %7 {strides = array<i32>} : memref<256x256xf32, #tpu.memory_space<vmem>>, vector<256x128xf32>,
    %c0_i32_8 = arith.constant 0 : i32
    %9 = arith.cmpi eq, %arg1, %c0_i32_8 : i32
    %10 = arith.extui %9 : i1 to i32
    %c0_i32_9 = arith.constant 0 : i32
    %11 = arith.cmpi ne, %10, %c0_i32_9 : i32
    scf.if %11 {
      %c0_10 = arith.constant 0 : index
      %c0_11 = arith.constant 0 : index
      %12 = vector.load %arg9[%c0_10, %c0_11] : memref<256x256xf32, #tpu.memory_space<vmem>>, vector<256x128xf32>
      %c0_12 = arith.constant 0 : index
      %c0_13 = arith.constant 0 : index
      %13 = vector.load %arg5[%c0_12, %c0_13] : memref<256x1xf32, #tpu.memory_space<vmem>>, vector<256x1xf32>
      %14 = vector.broadcast %13 : vector<256x1xf32> to vector<256x128xf32>
      %15 = arith.mulf %12, %14 : vector<256x128xf32>
      %c0_14 = arith.constant 0 : index
      %c0_15 = arith.constant 0 : index
      %16 = vector.load %arg9[%c0_14, %c0_15] : memref<256x256xf32, #tpu.memory_space<vmem>>, vector<256x128xf32>
      tpu.vector_store %arg9[%c0_14, %c0_15], %15 {strides = array<i32>} : memref<256x256xf32, #tpu.memory_space<vmem>>, vector<256x128xf32>,
      %c0_16 = arith.constant 0 : index
      %c0_17 = arith.constant 0 : index
      %17 = vector.load %arg9[%c0_16, %c0_17] : memref<256x256xf32, #tpu.memory_space<vmem>>, vector<256x256xf32>
      %18 = arith.truncf %17 : vector<256x256xf32> to vector<256x256xbf16>
      %c0_18 = arith.constant 0 : index
      %c0_19 = arith.constant 0 : index
      %19 = vector.load %arg6[%c0_18, %c0_19] : memref<256x128xbf16, #tpu.memory_space<vmem>>, vector<256x128xbf16>
      %cst_20 = arith.constant dense<0.000000e+00> : vector<256x128xf32>
      %20 = tpu.matmul %18, %19, %cst_20 {dimension_numbers = #tpu.dot_dimension_numbers<[1], [0], [0], [1], [0, 0, 1, 1], [], []>} : vector<256x256xbf16>, vector<256x128xbf16>, vector<256x128xf32> -> vector<256x128xf32>
      %c0_21 = arith.constant 0 : index
      %c0_22 = arith.constant 0 : index
      %21 = vector.load %arg7[%c0_21, %c0_22] : memref<1x128xf32, #tpu.memory_space<vmem>>, vector<1x128xf32>
      %22 = vector.broadcast %21 : vector<1x128xf32> to vector<256x128xf32>
      %23 = arith.addf %20, %22 : vector<256x128xf32>
      %cst_23 = arith.constant 0.000000e+00 : f32
      %24 = vector.broadcast %cst_23 : f32 to vector<256x128xf32>
      %25 = arith.maximumf %23, %24 : vector<256x128xf32>
      %c0_24 = arith.constant 0 : index
      %c0_25 = arith.constant 0 : index
      %26 = vector.load %arg8[%c0_24, %c0_25] : memref<256x128xf32, #tpu.memory_space<vmem>>, vector<256x128xf32>
      tpu.vector_store %arg8[%c0_24, %c0_25], %25 {strides = array<i32>} : memref<256x128xf32, #tpu.memory_space<vmem>>, vector<256x128xf32>,
    } else {
    }
    return
  }
  func.func @transform_0(%arg0: i32, %arg1: i32) -> (i32, i32) {
    %c0_i32 = arith.constant 0 : i32
    return %arg0, %arg1 : i32, i32
  }
  func.func @transform_1(%arg0: i32, %arg1: i32) -> (i32, i32) {
    %c0_i32 = arith.constant 0 : i32
    %c0_i32_0 = arith.constant 0 : i32
    return %arg1, %c0_i32 : i32, i32
  }
  func.func @transform_2(%arg0: i32, %arg1: i32) -> (i32, i32) {
    %c0_i32 = arith.constant 0 : i32
    %c0_i32_0 = arith.constant 0 : i32
    return %arg0, %c0_i32 : i32, i32
  }
  func.func @transform_3(%arg0: i32, %arg1: i32) -> (i32, i32) {
    %c0_i32 = arith.constant 0 : i32
    %c0_i32_0 = arith.constant 0 : i32
    return %arg0, %c0_i32 : i32, i32
  }
  func.func @transform_4(%arg0: i32, %arg1: i32) -> (i32, i32) {
    %c0_i32 = arith.constant 0 : i32
    %c0_i32_0 = arith.constant 0 : i32
    %c0_i32_1 = arith.constant 0 : i32
    return %c0_i32, %c0_i32_0 : i32, i32
  }
  func.func @transform_5(%arg0: i32, %arg1: i32) -> (i32, i32) {
    %c0_i32 = arith.constant 0 : i32
    %c0_i32_0 = arith.constant 0 : i32
    %c0_i32_1 = arith.constant 0 : i32
    return %c0_i32, %c0_i32_0 : i32, i32
  }
  func.func @transform_6(%arg0: i32, %arg1: i32) -> (i32, i32) {
    %c0_i32 = arith.constant 0 : i32
    %c0_i32_0 = arith.constant 0 : i32
    return %arg0, %c0_i32 : i32, i32
  }
}

module attributes {stable_mosaic.version = 11 : i64} {
  func.func @sage_conv_kernel(%arg0: i32, %arg1: i32, %arg2: memref<256x512xbf16, #tpu.memory_space<vmem>>, %arg3: memref<512x128xbf16, #tpu.memory_space<vmem>>, %arg4: memref<256x128xbf16, #tpu.memory_space<vmem>>, %arg5: memref<256x1xf32, #tpu.memory_space<vmem>>, %arg6: memref<256x128xbf16, #tpu.memory_space<vmem>>, %arg7: memref<1x128xf32, #tpu.memory_space<vmem>>, %arg8: memref<256x128xbf16, #tpu.memory_space<vmem>>, %arg9: memref<256x256xf32, #tpu.memory_space<vmem>>) attributes {dimension_semantics = [#tpu.dimension_semantics<parallel>, #tpu.dimension_semantics<arbitrary>], iteration_bounds = array<i64: 2, 1>, scalar_prefetch = 0 : i64, scratch_operands = 1 : i64, tpu.core_type = #tpu.core_type<tc>, window_params = [{transform_indices = @transform_0, window_bounds = array<i64: 256, 512>}, {transform_indices = @transform_1, window_bounds = array<i64: 512, 128>}, {transform_indices = @transform_2, window_bounds = array<i64: 256, 128>}, {transform_indices = @transform_3, window_bounds = array<i64: 256, 1>}, {pipeline_mode = #tpu.pipeline_mode<synchronous>, transform_indices = @transform_4, window_bounds = array<i64: 256, 128>}, {pipeline_mode = #tpu.pipeline_mode<synchronous>, transform_indices = @transform_5, window_bounds = array<i64: 1, 128>}, {transform_indices = @transform_6, window_bounds = array<i64: 256, 128>}]} {
    %c0_i32 = arith.constant 0 : i32
    %0 = arith.cmpi eq, %arg1, %c0_i32 : i32
    %1 = arith.extui %0 : i1 to i32
    %c0_i32_0 = arith.constant 0 : i32
    %2 = arith.cmpi ne, %1, %c0_i32_0 : i32
    scf.if %2 {
      %cst_10 = arith.constant 0.000000e+00 : f32
      %12 = vector.broadcast %cst_10 : f32 to vector<256x128xf32>
      %c0_11 = arith.constant 0 : index
      %c0_12 = arith.constant 0 : index
      %13 = vector.load %arg9[%c0_11, %c0_12] : memref<256x256xf32, #tpu.memory_space<vmem>>, vector<256x128xf32>
      tpu.vector_store %arg9[%c0_11, %c0_12], %12 {strides = array<i32>} : memref<256x256xf32, #tpu.memory_space<vmem>>, vector<256x128xf32>,
      %c0_13 = arith.constant 0 : index
      %c0_14 = arith.constant 0 : index
      %14 = vector.load %arg4[%c0_13, %c0_14] : memref<256x128xbf16, #tpu.memory_space<vmem>>, vector<256x128xbf16>
      %15 = arith.extf %14 : vector<256x128xbf16> to vector<256x128xf32>
      %c0_15 = arith.constant 0 : index
      %c128 = arith.constant 128 : index
      %16 = vector.load %arg9[%c0_15, %c128] : memref<256x256xf32, #tpu.memory_space<vmem>>, vector<256x128xf32>
      tpu.vector_store %arg9[%c0_15, %c128], %15 {strides = array<i32>} : memref<256x256xf32, #tpu.memory_space<vmem>>, vector<256x128xf32>,
    } else {
    }
    %c0 = arith.constant 0 : index
    %c0_1 = arith.constant 0 : index
    %3 = vector.load %arg9[%c0, %c0_1] : memref<256x256xf32, #tpu.memory_space<vmem>>, vector<256x128xf32>
    %c0_2 = arith.constant 0 : index
    %c0_3 = arith.constant 0 : index
    %4 = vector.load %arg2[%c0_2, %c0_3] : memref<256x512xbf16, #tpu.memory_space<vmem>>, vector<256x512xbf16>
    %c0_4 = arith.constant 0 : index
    %c0_5 = arith.constant 0 : index
    %5 = vector.load %arg3[%c0_4, %c0_5] : memref<512x128xbf16, #tpu.memory_space<vmem>>, vector<512x128xbf16>
    %cst = arith.constant dense<0.000000e+00> : vector<256x128xf32>
    %6 = tpu.matmul %4, %5, %cst {dimension_numbers = #tpu.dot_dimension_numbers<[1], [0], [0], [1], [0, 0, 1, 1], [], []>} : vector<256x512xbf16>, vector<512x128xbf16>, vector<256x128xf32> -> vector<256x128xf32>
    %7 = arith.addf %3, %6 : vector<256x128xf32>
    %c0_6 = arith.constant 0 : index
    %c0_7 = arith.constant 0 : index
    %8 = vector.load %arg9[%c0_6, %c0_7] : memref<256x256xf32, #tpu.memory_space<vmem>>, vector<256x128xf32>
    tpu.vector_store %arg9[%c0_6, %c0_7], %7 {strides = array<i32>} : memref<256x256xf32, #tpu.memory_space<vmem>>, vector<256x128xf32>,
    %c0_i32_8 = arith.constant 0 : i32
    %9 = arith.cmpi eq, %arg1, %c0_i32_8 : i32
    %10 = arith.extui %9 : i1 to i32
    %c0_i32_9 = arith.constant 0 : i32
    %11 = arith.cmpi ne, %10, %c0_i32_9 : i32
    scf.if %11 {
      %c0_10 = arith.constant 0 : index
      %c0_11 = arith.constant 0 : index
      %12 = vector.load %arg9[%c0_10, %c0_11] : memref<256x256xf32, #tpu.memory_space<vmem>>, vector<256x128xf32>
      %c0_12 = arith.constant 0 : index
      %c0_13 = arith.constant 0 : index
      %13 = vector.load %arg5[%c0_12, %c0_13] : memref<256x1xf32, #tpu.memory_space<vmem>>, vector<256x1xf32>
      %14 = vector.broadcast %13 : vector<256x1xf32> to vector<256x128xf32>
      %15 = arith.mulf %12, %14 : vector<256x128xf32>
      %c0_14 = arith.constant 0 : index
      %c0_15 = arith.constant 0 : index
      %16 = vector.load %arg9[%c0_14, %c0_15] : memref<256x256xf32, #tpu.memory_space<vmem>>, vector<256x128xf32>
      tpu.vector_store %arg9[%c0_14, %c0_15], %15 {strides = array<i32>} : memref<256x256xf32, #tpu.memory_space<vmem>>, vector<256x128xf32>,
      %c0_16 = arith.constant 0 : index
      %c0_17 = arith.constant 0 : index
      %17 = vector.load %arg9[%c0_16, %c0_17] : memref<256x256xf32, #tpu.memory_space<vmem>>, vector<256x256xf32>
      %18 = arith.truncf %17 : vector<256x256xf32> to vector<256x256xbf16>
      %c0_18 = arith.constant 0 : index
      %c0_19 = arith.constant 0 : index
      %19 = vector.load %arg6[%c0_18, %c0_19] : memref<256x128xbf16, #tpu.memory_space<vmem>>, vector<256x128xbf16>
      %cst_20 = arith.constant dense<0.000000e+00> : vector<256x128xf32>
      %20 = tpu.matmul %18, %19, %cst_20 {dimension_numbers = #tpu.dot_dimension_numbers<[1], [0], [0], [1], [0, 0, 1, 1], [], []>} : vector<256x256xbf16>, vector<256x128xbf16>, vector<256x128xf32> -> vector<256x128xf32>
      %c0_21 = arith.constant 0 : index
      %c0_22 = arith.constant 0 : index
      %21 = vector.load %arg7[%c0_21, %c0_22] : memref<1x128xf32, #tpu.memory_space<vmem>>, vector<1x128xf32>
      %22 = vector.broadcast %21 : vector<1x128xf32> to vector<256x128xf32>
      %23 = arith.addf %20, %22 : vector<256x128xf32>
      %cst_23 = arith.constant 0.000000e+00 : f32
      %24 = vector.broadcast %cst_23 : f32 to vector<256x128xf32>
      %25 = arith.maximumf %23, %24 : vector<256x128xf32>
      %26 = arith.truncf %25 : vector<256x128xf32> to vector<256x128xbf16>
      %c0_24 = arith.constant 0 : index
      %c0_25 = arith.constant 0 : index
      %27 = vector.load %arg8[%c0_24, %c0_25] : memref<256x128xbf16, #tpu.memory_space<vmem>>, vector<256x128xbf16>
      tpu.vector_store %arg8[%c0_24, %c0_25], %26 {strides = array<i32>} : memref<256x128xbf16, #tpu.memory_space<vmem>>, vector<256x128xbf16>,
    } else {
    }
    return
  }
  func.func @transform_0(%arg0: i32, %arg1: i32) -> (i32, i32) {
    %c0_i32 = arith.constant 0 : i32
    return %arg0, %arg1 : i32, i32
  }
  func.func @transform_1(%arg0: i32, %arg1: i32) -> (i32, i32) {
    %c0_i32 = arith.constant 0 : i32
    %c0_i32_0 = arith.constant 0 : i32
    return %arg1, %c0_i32 : i32, i32
  }
  func.func @transform_2(%arg0: i32, %arg1: i32) -> (i32, i32) {
    %c0_i32 = arith.constant 0 : i32
    %c0_i32_0 = arith.constant 0 : i32
    return %arg0, %c0_i32 : i32, i32
  }
  func.func @transform_3(%arg0: i32, %arg1: i32) -> (i32, i32) {
    %c0_i32 = arith.constant 0 : i32
    %c0_i32_0 = arith.constant 0 : i32
    return %arg0, %c0_i32 : i32, i32
  }
  func.func @transform_4(%arg0: i32, %arg1: i32) -> (i32, i32) {
    %c0_i32 = arith.constant 0 : i32
    %c0_i32_0 = arith.constant 0 : i32
    %c0_i32_1 = arith.constant 0 : i32
    return %c0_i32, %c0_i32_0 : i32, i32
  }
  func.func @transform_5(%arg0: i32, %arg1: i32) -> (i32, i32) {
    %c0_i32 = arith.constant 0 : i32
    %c0_i32_0 = arith.constant 0 : i32
    %c0_i32_1 = arith.constant 0 : i32
    return %c0_i32, %c0_i32_0 : i32, i32
  }
  func.func @transform_6(%arg0: i32, %arg1: i32) -> (i32, i32) {
    %c0_i32 = arith.constant 0 : i32
    %c0_i32_0 = arith.constant 0 : i32
    return %arg0, %c0_i32 : i32, i32
  }
}

</mosaic_0001>

<bundles_post_ra>
// kernel: sage_forward.3
= control target key start
LH: loop header
LB: loop body
LE: loop exit
PB: predicated region body
PF: predicated region fallthrough
CT: control target
= control target key end

     0   :  { %s3193_s21 = smov 0   ;;  %s3195_s22 = smov 0   ;;  %s3670_s0 = inlined_call_operand.vmem [shape: bf16[512,512], index: 0, kind: input, shape index: {}]   ;;  %s3671_s1 = inlined_call_operand.vmem [shape: bf16[512,128], index: 1, kind: input, shape index: {}, may-alias: {1,2}]   ;;  %s3672_s2 = inlined_call_operand.vmem [shape: bf16[512,128], index: 2, kind: input, shape index: {}, may-alias: {1,2}]   ;;  %s3673_s3 = inlined_call_operand.vmem [shape: f32[512,1], index: 3, kind: input, shape index: {}]   ;;  %s3674_s4 = inlined_call_operand.vmem [shape: bf16[256,128], index: 4, kind: input, shape index: {}]   ;;  %s3675_s5 = inlined_call_operand.vmem [shape: f32[1,128], index: 5, kind: input, shape index: {}]   ;;  %s3676_s6 = inlined_call_operand.vmem [shape: f32[512,128], index: 6, kind: output, shape index: {}]  }
   0x1   :  { %s3197_s23 = smov 0  }
   0x2 LB: > { %s28_s24 = sadd.s32 1, %s3151_s22  ;;  %p2405_p0 = scmp.ge.s32.totalorder %s3155_s23, 1  ;;  %s3155_s23 = sphi %s3197_s23, %s16_s23   ;;  %s3151_s22 = sphi %s3195_s22, %s3678_s22   ;;  %s3147_s21 = sphi %s3193_s21, %s3677_s21  }
   0x3   : > { %p30_p1 = scmp.ge.s32.totalorder %s28_s24, 2  ;;  %p266_p2 = scmp.lt.s32.totalorder %s3155_s23, 3 }
   0x5   : > { %s3680_s24 = smov (%p30_p1, %s28_s24), 0  ;;  %p267_p3 = pnand %p2405_p0, %p266_p2 }
   0x6   : > { %s2406_s27 = sshll.u32 (!%p267_p3), %s3147_s21, 5 }
   0x7   : > { %270 = sbr.rel (%p267_p3) target bundleno = 642 (0x282), region = 44  ;;  %p318_p4 = scmp.lt.s32.totalorder (!%p267_p3), %s2406_s27, 63 }
   0xc   : > { %v2989_v0 = vld [vmem:[%s3671_s1 + $0x78] sm:$0xff]   ;;  %v2991_v2 = vld [vmem:[%s3671_s1 + $0x70] sm:$0xff]   ;;  %v2993_v4 = vld [vmem:[%s3671_s1 + $0x68] sm:$0xff]   ;;  %v3157_v5 = vmov 0   ;;  %s3682_s27 = smov (!%p318_p4, %s2406_s27), 63 }
   0xd   : > { %v2990_v1 = vld [vmem:[%s3671_s1 + $0x38] sm:$0xff]   ;;  %2946 = vmatprep.subr.bf16.mxu1 %v2989_v0  ;;  %2610 = vmatprep.subr.bf16.mxu0 %v2989_v0  ;;  %v2992_v3 = vld [vmem:[%s3671_s1 + $0x30] sm:$0xff]   ;;  %v2994_v6 = vld [vmem:[%s3671_s1 + $0x28] sm:$0xff]   ;;  %s2530_s18 = sshll.u32 %s3682_s27, 4  ;;  %s2412_s17 = sshll.u32 %s3682_s27, 3 }
   0xe   : > { %2954 = vmatpush3.bf16.msra.mxu1 %v2990_v1  ;;  %2611 = vmatpush3.bf16.msra.mxu0 %v2990_v1  ;;  %v2995_v7 = vld [vmem:[%s3671_s1 + $0x60] sm:$0xff]   ;;  %v2997_v9 = vld [vmem:[%s3671_s1 + $0x58] sm:$0xff]   ;;  %s3244_s26 = scalar_lea.vmem %s3670_s0, %s2530_s18  ;;  %v2999_v11 = vld [vmem:[%s3671_s1 + $0x50] sm:$0xff]   ;;  %s3313_s25 = scalar_lea.vmem %s3673_s3, %s2412_s17 }
   0xf   : > { %2947 = vmatprep.subr.bf16.mxu1 %v2991_v2  ;;  %2612 = vmatprep.subr.bf16.mxu0 %v2991_v2  ;;  %v2996_v8 = vld [vmem:[%s3671_s1 + $0x20] sm:$0xff]   ;;  %v2998_v10 = vld [vmem:[%s3671_s1 + $0x18] sm:$0xff]   ;;  %v3000_v13 = vld [vmem:[%s3671_s1 + $0x10] sm:$0xff]   ;;  %s2410_s12 = sshll.u32 %s3682_s27, 2  ;;  %s3596_s20 = scalar_lea.vmem %s3676_s6, %s2412_s17 }
  0x10   : > { %2987 = vset.pattern.permute.xlu0 %v3157_v5  ;;  %2988 = vset.pattern.permute.xlu1 %v3157_v5  ;;  %v3007_v12 = vld [vmem:[%s3244_s26 + $0x104] ss:$16 sps:$4 sm:$0xff]   ;;  %v3001_v14 = vld [vmem:[%s3671_s1 + $0x48] sm:$0xff]   ;;  %v3008_v18 = vld [vmem:[%s3671_s1 + $0xf8] sm:$0xff]   ;;  %s3461_s15 = scalar_lea.vmem %s3672_s2, %s2410_s12 }
  0x11   : > { %1253 = vmatprep.mubr.bf16.mxu1 %v3007_v12  ;;  %v3002_v15 = vld [vmem:[%s3671_s1 + $0x8] sm:$0xff]   ;;  %v3003_v16 = vld [vmem:[%s3671_s1 + $0x40] sm:$0xff]   ;;  %v3009_v20 = vld [vmem:[%s3671_s1 + $0xb8] sm:$0xff]  }
  0x12   : > { %2955 = vmatpush3.bf16.msra.mxu1 %v2992_v3  ;;  %2613 = vmatpush3.bf16.msra.mxu0 %v2992_v3  ;;  %v3004_v17 = vld [vmem:[%s3671_s1] sm:$0xff]   ;;  %v3013_v22 = vld [vmem:[%s3671_s1 + $0xf0] sm:$0xff]   ;;  %v3018_v24 = vld [vmem:[%s3671_s1 + $0xe8] sm:$0xff]  }
  0x13   : > { %2948 = vmatprep.subr.bf16.mxu1 %v2993_v4  ;;  %2614 = vmatprep.subr.bf16.mxu0 %v2993_v4  ;;  %v3005_v19 = vld [vmem:[%s3244_s26 + $0x100] ss:$16 sps:$4 sm:$0xff]   ;;  %v3010_v21 = vld [vmem:[%s3244_s26 + $0x124] ss:$16 sps:$4 sm:$0xff]   ;;  %v3019_v27 = vld [vmem:[%s3671_s1 + $0xa8] sm:$0xff]  }
  0x14   : > { %v3014_v23 = vld [vmem:[%s3671_s1 + $0xb0] sm:$0xff]   ;;  %v3023_v28 = vld [vmem:[%s3671_s1 + $0xe0] sm:$0xff]   ;;  %v3028_v32 = vld [vmem:[%s3671_s1 + $0xd8] sm:$0xff]  }
  0x15   : > { %v3012_v25 = vld [vmem:[%s3244_s26 + $0x120] ss:$16 sps:$4 sm:$0xff]   ;;  %v3015_v26 = vld [vmem:[%s3244_s26 + $0x144] ss:$16 sps:$4 sm:$0xff]   ;;  %v3029_v36 = vld [vmem:[%s3671_s1 + $0x98] sm:$0xff]  }
  0x16   : > { %2956 = vmatpush3.bf16.msra.mxu1 %v2994_v6  ;;  %2615 = vmatpush3.bf16.msra.mxu0 %v2994_v6  ;;  %v3024_v29 = vld [vmem:[%s3671_s1 + $0xa0] sm:$0xff]   ;;  %v3033_v37 = vld [vmem:[%s3671_s1 + $0xd0] sm:$0xff]   ;;  %v3038_v42 = vld [vmem:[%s3671_s1 + $0xc8] sm:$0xff]  }
  0x17   : > { %2949 = vmatprep.subr.bf16.mxu1 %v2995_v7  ;;  %2616 = vmatprep.subr.bf16.mxu0 %v2995_v7  ;;  %v3045_v30 = vld [vmem:[%s3244_s26] ss:$16 sps:$4 sm:$0xff]   ;;  %v3047_v31 = vld [vmem:[%s3244_s26 + $0x4] ss:$16 sps:$4 sm:$0xff]   ;;  %v1579_v43 = vld [vmem:[%s3313_s25 + $0x8] sm:$0xff] }
  0x18   : > { %1189 = vmatprep.mubr.bf16.mxu0 %v3047_v31  ;;  %v3017_v33 = vld [vmem:[%s3244_s26 + $0x140] ss:$16 sps:$4 sm:$0xff]   ;;  %v3051_v34 = vld [vmem:[%s3244_s26 + $0x24] ss:$16 sps:$4 sm:$0xff]   ;;  %v3039_v47 = vld [vmem:[%s3671_s1 + $0x88] sm:$0xff]  }
  0x19   : > { %v3020_v35 = vld [vmem:[%s3244_s26 + $0x164] ss:$16 sps:$4 sm:$0xff]   ;;  %v3053_v39 = vld [vmem:[%s3244_s26 + $0x20] ss:$16 sps:$4 sm:$0xff]   ;;  %v1581_v49 = vld [vmem:[%s3313_s25 + $0x18] sm:$0xff] }
  0x1a   : > { %2957 = vmatpush3.bf16.msra.mxu1 %v2996_v8  ;;  %2617 = vmatpush3.bf16.msra.mxu0 %v2996_v8  ;;  %v3034_v38 = vld [vmem:[%s3671_s1 + $0x90] sm:$0xff]   ;;  %v1578_v40 = vld [vmem:[%s3313_s25] sm:$0xff]  ;;  %v1583_v54 = vld [vmem:[%s3313_s25 + $0x28] sm:$0xff] }
  0x1b   : > { %2950 = vmatprep.subr.bf16.mxu1 %v2997_v9  ;;  %2618 = vmatprep.subr.bf16.mxu0 %v2997_v9  ;;  %v3057_v41 = vld [vmem:[%s3244_s26 + $0x44] ss:$16 sps:$4 sm:$0xff]   ;;  %v3022_v45 = vld [vmem:[%s3244_s26 + $0x160] ss:$16 sps:$4 sm:$0xff]   ;;  %v1585_v58 = vld [vmem:[%s3313_s25 + $0x38] sm:$0xff] }
  0x1c   : > { %1612 = vperm.xlu0 %2987, %v1578_v40   ;;  %v1580_v44 = vld [vmem:[%s3313_s25 + $0x10] sm:$0xff]  ;;  %v3043_v48 = vld [vmem:[%s3671_s1 + $0xc0] sm:$0xff]   ;;  %v1587_v62 = vld [vmem:[%s3313_s25 + $0x48] sm:$0xff] }
  0x1d   : > { %1622 = vperm.xlu1 %2988, %v1580_v44   ;;  %v3025_v46 = vld [vmem:[%s3244_s26 + $0x184] ss:$16 sps:$4 sm:$0xff]   ;;  %v3059_v52 = vld [vmem:[%s3244_s26 + $0x40] ss:$16 sps:$4 sm:$0xff]   ;;  %v1589_v2 = vld [vmem:[%s3313_s25 + $0x58] sm:$0xff] }
  0x1e   : > { %2958 = vmatpush3.bf16.msra.mxu1 %v2998_v10  ;;  %2619 = vmatpush3.bf16.msra.mxu0 %v2998_v10  ;;  %v1582_v50 = vld [vmem:[%s3313_s25 + $0x20] sm:$0xff]  ;;  %v1584_v55 = vld [vmem:[%s3313_s25 + $0x30] sm:$0xff]  ;;  %v1591_v6 = vld [vmem:[%s3313_s25 + $0x68] sm:$0xff] }
  0x1f   : > { %2951 = vmatprep.subr.bf16.mxu1 %v2999_v11  ;;  %2620 = vmatprep.subr.bf16.mxu0 %v2999_v11  ;;  %v3044_v51 = vld [vmem:[%s3671_s1 + $0x80] sm:$0xff]   ;;  %v1588_v63 = vld [vmem:[%s3313_s25 + $0x50] sm:$0xff]  ;;  %v1593_v10 = vld [vmem:[%s3313_s25 + $0x78] sm:$0xff] }
  0x20   : > { %1617 = vperm.xlu0 %2987, %v1579_v43   ;;  %v3063_v53 = vld [vmem:[%s3244_s26 + $0x64] ss:$16 sps:$4 sm:$0xff]   ;;  %v3027_v56 = vld [vmem:[%s3244_s26 + $0x180] ss:$16 sps:$4 sm:$0xff]   ;;  %v3056_v31 = vld [vmem:[%s3244_s26 + $0x28] ss:$16 sps:$4 sm:$0xff]  }
  0x21   : > { %1627 = vperm.xlu1 %2988, %v1581_v49   ;;  %v3030_v57 = vld [vmem:[%s3244_s26 + $0x1a4] ss:$16 sps:$4 sm:$0xff]   ;;  %v3065_v60 = vld [vmem:[%s3244_s26 + $0x60] ss:$16 sps:$4 sm:$0xff]   ;;  %v3117_v40 = vld [vmem:[%s3674_s4 + $0x78] sm:$0xff]  }
  0x22   : > { %2959 = vmatpush3.bf16.msra.mxu1 %v3000_v13  ;;  %2621 = vmatpush3.bf16.msra.mxu0 %v3000_v13  ;;  %v1586_v59 = vld [vmem:[%s3313_s25 + $0x40] sm:$0xff]  ;;  %v1592_v7 = vld [vmem:[%s3313_s25 + $0x70] sm:$0xff]  ;;  %v3072_v43 = vld [vmem:[%s3244_s26 + $0x8c] ss:$16 sps:$4 sm:$0xff]  }
  0x23   : > { %2952 = vmatprep.subr.bf16.mxu1 %v3001_v14  ;;  %2622 = vmatprep.subr.bf16.mxu0 %v3001_v14  ;;  %v3069_v61 = vld [vmem:[%s3244_s26 + $0x84] ss:$16 sps:$4 sm:$0xff]   ;;  %v3032_v0 = vld [vmem:[%s3244_s26 + $0x1a0] ss:$16 sps:$4 sm:$0xff]   ;;  %v1595_v14 = vld [vmem:[%s3313_s25 + $0x88] sm:$0xff] }
  0x24   : > { %1632 = vperm.xlu0 %2987, %v1582_v50   ;;  %v3035_v1 = vld [vmem:[%s3244_s26 + $0x1c4] ss:$16 sps:$4 sm:$0xff]   ;;  %v3071_v4 = vld [vmem:[%s3244_s26 + $0x80] ss:$16 sps:$4 sm:$0xff]   ;;  %v3122_v49 = vld [vmem:[%s3674_s4 + $0x28] sm:$0xff]  }
  0x25   : > { %1637 = vperm.xlu1 %2988, %v1583_v54   ;;  %v1590_v3 = vld [vmem:[%s3313_s25 + $0x60] sm:$0xff]  ;;  %v3119_v44 = vld [vmem:[%s3674_s4 + $0x70] sm:$0xff]   ;;  %v3080_v50 = vld [vmem:[%s3244_s26 + $0xa8] ss:$16 sps:$4 sm:$0xff]  }
  0x26   : > { %2960 = vmatpush3.bf16.msra.mxu1 %v3002_v15  ;;  %2623 = vmatpush3.bf16.msra.mxu0 %v3002_v15  ;;  %v3075_v5 = vld [vmem:[%s3244_s26 + $0xa4] ss:$16 sps:$4 sm:$0xff]   ;;  %v3037_v8 = vld [vmem:[%s3244_s26 + $0x1c0] ss:$16 sps:$4 sm:$0xff]   ;;  %v3086_v54 = vld [vmem:[%s3244_s26 + $0xc8] ss:$16 sps:$4 sm:$0xff]  }
  0x27   : > { %2953 = vmatprep.subr.bf16.mxu1 %v3003_v16  ;;  %2624 = vmatprep.subr.bf16.mxu0 %v3003_v16  ;;  %v3040_v9 = vld [vmem:[%s3244_s26 + $0x1e4] ss:$16 sps:$4 sm:$0xff]   ;;  %v3077_v12 = vld [vmem:[%s3244_s26 + $0xa0] ss:$16 sps:$4 sm:$0xff]  }
  0x28   : > { %1642 = vperm.xlu0 %2987, %v1584_v55   ;;  %v1594_v11 = vld [vmem:[%s3313_s25 + $0x80] sm:$0xff]  ;;  %v1596_v16 = vld [vmem:[%s3313_s25 + $0x90] sm:$0xff]  ;;  %v3090_v55 = vld [vmem:[%s3244_s26 + $0xec] ss:$16 sps:$4 sm:$0xff]  }
  0x29   : > { %1647 = vperm.xlu1 %2988, %v1585_v58   ;;  %v3081_v13 = vld [vmem:[%s3244_s26 + $0xc4] ss:$16 sps:$4 sm:$0xff]   ;;  %v3042_v15 = vld [vmem:[%s3244_s26 + $0x1e0] ss:$16 sps:$4 sm:$0xff]   ;;  %v3092_v58 = vld [vmem:[%s3244_s26 + $0xe8] ss:$16 sps:$4 sm:$0xff]  }
  0x2a   : > { %2961 = vmatpush3.bf16.msra.mxu1 %v3004_v17  ;;  %2625 = vmatpush3.bf16.msra.mxu0 %v3004_v17  ;;  %v3050_v17 = vld [vmem:[%s3244_s26 + $0xc] ss:$16 sps:$4 sm:$0xff]  }
  0x2b   : > { %2722 = vmatprep.subr.bf16.mxu1 %v3008_v18  ;;  %v1597_v18 = vld [vmem:[%s3313_s25 + $0x98] sm:$0xff]  ;;  %2834 = vmatprep.subr.bf16.mxu0 %v3117_v40 }
  0x2c   : > { %1652 = vperm.xlu0 %2987, %v1586_v59   ;;  %v3093_v59 = vld [vmem:[%s3244_s26 + $0x10c] ss:$16 sps:$4 sm:$0xff]  }
  0x2d   : > { %1254 = vmatmul.mubr.bf16.vlgmr.msra.gmra.mxu1 %v3005_v19  ;;  %1190 = vmatmul.mubr.bf16.vlgmr.msra.gmra.mxu0 %v3045_v30  ;;  %v1598_v19 = vld [vmem:[%s3313_s25 + $0xa0] sm:$0xff]  ;;  %v1604_v30 = vld [vmem:[%s3313_s25 + $0xd0] sm:$0xff] }
  0x2e   : > { %2723 = vmatpush3.bf16.msra.mxu1 %v3009_v20  ;;  %1261 = vmatprep.mubr.bf16.mxu1 %v3010_v21  ;;  %v3083_v20 = vld [vmem:[%s3244_s26 + $0xc0] ss:$16 sps:$4 sm:$0xff]   ;;  %v3087_v21 = vld [vmem:[%s3244_s26 + $0xe4] ss:$16 sps:$4 sm:$0xff]  }
  0x2f   : > { %2724 = vmatprep.subr.bf16.mxu1 %v3013_v22  ;;  %1197 = vmatprep.mubr.bf16.mxu0 %v3051_v34  ;;  %v1599_v22 = vld [vmem:[%s3313_s25 + $0xa8] sm:$0xff]  ;;  %v1606_v34 = vld [vmem:[%s3313_s25 + $0xe0] sm:$0xff] }
  0x30   : > { %1657 = vperm.xlu1 %2988, %v1587_v62   ;;  %1662 = vperm.xlu0 %2987, %v1588_v63   ;;  %v3095_v62 = vld [vmem:[%s3244_s26 + $0x108] ss:$16 sps:$4 sm:$0xff]   ;;  %v3096_v63 = vld [vmem:[%s3244_s26 + $0x12c] ss:$16 sps:$4 sm:$0xff]  }
  0x32   : > { %2725 = vmatpush3.bf16.msra.mxu1 %v3014_v23  ;;  %v1600_v23 = vld [vmem:[%s3313_s25 + $0xb0] sm:$0xff] }
  0x33   : > { %2726 = vmatprep.subr.bf16.mxu1 %v3018_v24  ;;  %v3048_v24 = vld [vmem:[%s3244_s26 + $0x8] ss:$16 sps:$4 sm:$0xff]  }
  0x34   : > { %1667 = vperm.xlu1 %2988, %v1589_v2   ;;  %1672 = vperm.xlu0 %2987, %v1590_v3   ;;  %v3098_v2 = vld [vmem:[%s3244_s26 + $0x128] ss:$16 sps:$4 sm:$0xff]   ;;  %v3099_v3 = vld [vmem:[%s3244_s26 + $0x14c] ss:$16 sps:$4 sm:$0xff]  }
  0x35   : > { %1262 = vmatmul.mubr.bf16.gmra.mxu1 %v3012_v25  ;;  %1198 = vmatmul.mubr.bf16.gmra.mxu0 %v3053_v39  ;;  %v3054_v25 = vld [vmem:[%s3244_s26 + $0x2c] ss:$16 sps:$4 sm:$0xff]  }
  0x36   : > { %1269 = vmatprep.mubr.bf16.mxu1 %v3015_v26  ;;  %2727 = vmatpush3.bf16.msra.mxu1 %v3019_v27  ;;  %v1601_v26 = vld [vmem:[%s3313_s25 + $0xb8] sm:$0xff]  ;;  %v1602_v27 = vld [vmem:[%s3313_s25 + $0xc0] sm:$0xff] }
  0x37   : > { %2728 = vmatprep.subr.bf16.mxu1 %v3023_v28  ;;  %1205 = vmatprep.mubr.bf16.mxu0 %v3057_v41  ;;  %v3089_v28 = vld [vmem:[%s3244_s26 + $0xe0] ss:$16 sps:$4 sm:$0xff]   ;;  %v1609_v39 = vld [vmem:[%s3313_s25 + $0xf8] sm:$0xff] }
  0x38   : > { %1677 = vperm.xlu1 %2988, %v1591_v6   ;;  %1682 = vperm.xlu0 %2987, %v1592_v7   ;;  %v3118_v41 = vld [vmem:[%s3674_s4 + $0x38] sm:$0xff]  }
  0x39   : > { %2835 = vmatpush3.bf16.msra.mxu0 %v3118_v41  ;;  %v3101_v6 = vld [vmem:[%s3244_s26 + $0x148] ss:$16 sps:$4 sm:$0xff]   ;;  %v3102_v7 = vld [vmem:[%s3244_s26 + $0x16c] ss:$16 sps:$4 sm:$0xff]  }
  0x3a   : > { %2729 = vmatpush3.bf16.msra.mxu1 %v3024_v29  ;;  %v1603_v29 = vld [vmem:[%s3313_s25 + $0xc8] sm:$0xff]  ;;  %2836 = vmatprep.subr.bf16.mxu0 %v3119_v44 }
  0x3b   : > { %2730 = vmatprep.subr.bf16.mxu1 %v3028_v32  ;;  %v3060_v32 = vld [vmem:[%s3244_s26 + $0x4c] ss:$16 sps:$4 sm:$0xff]  }
  0x3c   : > { %1687 = vperm.xlu1 %2988, %v1593_v10   ;;  %1692 = vperm.xlu0 %2987, %v1594_v11   ;;  %v3105_v10 = vld [vmem:[%s3244_s26 + $0x18c] ss:$16 sps:$4 sm:$0xff]   ;;  %v3107_v11 = vld [vmem:[%s3244_s26 + $0x188] ss:$16 sps:$4 sm:$0xff]  }
  0x3d   : > { %1270 = vmatmul.mubr.bf16.gmra.mxu1 %v3017_v33  ;;  %1206 = vmatmul.mubr.bf16.gmra.mxu0 %v3059_v52  ;;  %v1605_v33 = vld [vmem:[%s3313_s25 + $0xd8] sm:$0xff]  ;;  %v3123_v52 = vld [vmem:[%s3674_s4 + $0x60] sm:$0xff]  }
  0x3e   : > { %1277 = vmatprep.mubr.bf16.mxu1 %v3020_v35  ;;  %2731 = vmatpush3.bf16.msra.mxu1 %v3029_v36  ;;  %v1607_v35 = vld [vmem:[%s3313_s25 + $0xe8] sm:$0xff]  ;;  %v1608_v36 = vld [vmem:[%s3313_s25 + $0xf0] sm:$0xff] }
  0x3f   : > { %2732 = vmatprep.subr.bf16.mxu1 %v3033_v37  ;;  %1213 = vmatprep.mubr.bf16.mxu0 %v3063_v53  ;;  %v3062_v37 = vld [vmem:[%s3244_s26 + $0x48] ss:$16 sps:$4 sm:$0xff]   ;;  %v3124_v53 = vld [vmem:[%s3674_s4 + $0x20] sm:$0xff]  }
  0x40   : > { %1697 = vperm.xlu1 %2988, %v1595_v14   ;;  %1702 = vperm.xlu0 %2987, %v1596_v16   ;;  %v3111_v14 = vld [vmem:[%s3244_s26 + $0x1cc] ss:$16 sps:$4 sm:$0xff]  }
  0x41   : > { %v3114_v16 = vld [vmem:[%s3244_s26 + $0x1ec] ss:$16 sps:$4 sm:$0xff]  }
  0x42   : > { %2733 = vmatpush3.bf16.msra.mxu1 %v3034_v38  ;;  %v3066_v38 = vld [vmem:[%s3244_s26 + $0x6c] ss:$16 sps:$4 sm:$0xff]  }
  0x43   : > { %2734 = vmatprep.subr.bf16.mxu1 %v3038_v42  ;;  %v3068_v42 = vld [vmem:[%s3244_s26 + $0x68] ss:$16 sps:$4 sm:$0xff]  }
  0x44   : > { %1707 = vperm.xlu1 %2988, %v1597_v18   ;;  %1712 = vperm.xlu0 %2987, %v1598_v19  }
  0x45   : > { %1278 = vmatmul.mubr.bf16.gmra.mxu1 %v3022_v45  ;;  %1214 = vmatmul.mubr.bf16.gmra.mxu0 %v3065_v60  ;;  %v3120_v45 = vld [vmem:[%s3674_s4 + $0x30] sm:$0xff]  }
  0x46   : > { %1285 = vmatprep.mubr.bf16.mxu1 %v3025_v46  ;;  %2735 = vmatpush3.bf16.msra.mxu1 %v3039_v47  ;;  %v3074_v46 = vld [vmem:[%s3244_s26 + $0x88] ss:$16 sps:$4 sm:$0xff]   ;;  %v3078_v47 = vld [vmem:[%s3244_s26 + $0xac] ss:$16 sps:$4 sm:$0xff]   ;;  %v3127_v60 = vld [vmem:[%s3674_s4 + $0x50] sm:$0xff]  }
  0x47   : > { %2736 = vmatprep.subr.bf16.mxu1 %v3043_v48  ;;  %1221 = vmatprep.mubr.bf16.mxu0 %v3069_v61  ;;  %v3121_v48 = vld [vmem:[%s3674_s4 + $0x68] sm:$0xff]   ;;  %v3128_v61 = vld [vmem:[%s3674_s4 + $0x10] sm:$0xff]  }
  0x48   : > { %1717 = vperm.xlu1 %2988, %v1599_v22   ;;  %1722 = vperm.xlu0 %2987, %v1600_v23  }
  0x49   : > { %2837 = vmatpush3.bf16.msra.mxu0 %v3120_v45 }
  0x4a   : > { %2737 = vmatpush3.bf16.msra.mxu1 %v3044_v51  ;;  %2838 = vmatprep.subr.bf16.mxu0 %v3121_v48  ;;  %v3084_v51 = vld [vmem:[%s3244_s26 + $0xcc] ss:$16 sps:$4 sm:$0xff]  }
  0x4c   : > { %1727 = vperm.xlu1 %2988, %v1601_v26   ;;  %1732 = vperm.xlu0 %2987, %v1602_v27  }
  0x4d   : > { %1286 = vmatmul.mubr.bf16.gmra.mxu1 %v3027_v56  ;;  %1222 = vmatmul.mubr.bf16.gmra.mxu0 %v3071_v4  ;;  %v3125_v56 = vld [vmem:[%s3674_s4 + $0x58] sm:$0xff]   ;;  %v3131_v4 = vld [vmem:[%s3674_s4 + $0x40] sm:$0xff]  }
  0x4e   : > { %1293 = vmatprep.mubr.bf16.mxu1 %v3030_v57  ;;  %1229 = vmatprep.mubr.bf16.mxu0 %v3075_v5  ;;  %v3126_v57 = vld [vmem:[%s3674_s4 + $0x18] sm:$0xff]   ;;  %v3132_v5 = vld [vmem:[%s3674_s4] sm:$0xff]  }
  0x4f   : > { %2839 = vmatpush3.bf16.msra.mxu0 %v3122_v49 }
  0x50   : > { %1737 = vperm.xlu1 %2988, %v1603_v29   ;;  %1742 = vperm.xlu0 %2987, %v1604_v30  }
  0x51   : > { %2840 = vmatprep.subr.bf16.mxu0 %v3123_v52 }
  0x53   : > { %2841 = vmatpush3.bf16.msra.mxu0 %v3124_v53 }
  0x54   : > { %1747 = vperm.xlu1 %2988, %v1605_v33   ;;  %1752 = vperm.xlu0 %2987, %v1606_v34  }
  0x55   : > { %1294 = vmatmul.mubr.bf16.gmra.mxu1 %v3032_v0  ;;  %1230 = vmatmul.mubr.bf16.gmra.mxu0 %v3077_v12  ;;  %v3129_v0 = vld [vmem:[%s3674_s4 + $0x48] sm:$0xff]  }
  0x56   : > { %1301 = vmatprep.mubr.bf16.mxu1 %v3035_v1  ;;  %1237 = vmatprep.mubr.bf16.mxu0 %v3081_v13  ;;  %v3130_v1 = vld [vmem:[%s3674_s4 + $0x8] sm:$0xff]  }
  0x57   : > { %2842 = vmatprep.subr.bf16.mxu0 %v3125_v56  ;;  %v3108_v12 = vld [vmem:[%s3244_s26 + $0x1ac] ss:$16 sps:$4 sm:$0xff]   ;;  %v3110_v13 = vld [vmem:[%s3244_s26 + $0x1a8] ss:$16 sps:$4 sm:$0xff]  }
  0x58   : > { %1757 = vperm.xlu1 %2988, %v1607_v35   ;;  %1762 = vperm.xlu0 %2987, %v1608_v36  }
  0x59   : > { %2843 = vmatpush3.bf16.msra.mxu0 %v3126_v57 }
  0x5a   : > { %2844 = vmatprep.subr.bf16.mxu0 %v3127_v60 }
  0x5c   : > { %1767 = vperm.xlu1 %2988, %v1609_v39  }
  0x5d   : > { %1302 = vmatmul.mubr.bf16.gmra.mxu1 %v3037_v8  ;;  %1238 = vmatmul.mubr.bf16.gmra.mxu0 %v3083_v20  ;;  %v2532_v8 = vld [vmem:[%s3461_s15] sm:$0xff]  }
  0x5e   : > { %1309 = vmatprep.mubr.bf16.mxu1 %v3040_v9  ;;  %1245 = vmatprep.mubr.bf16.mxu0 %v3087_v21  ;;  %v3104_v9 = vld [vmem:[%s3244_s26 + $0x168] ss:$16 sps:$4 sm:$0xff]  }
  0x5f   : > { %2845 = vmatpush3.bf16.msra.mxu0 %v3128_v61 }
  0x60   : > { %2846 = vmatprep.subr.bf16.mxu0 %v3129_v0 }
  0x63   : > { %2847 = vmatpush3.bf16.msra.mxu0 %v3130_v1 }
  0x64   : > { %2848 = vmatprep.subr.bf16.mxu0 %v3131_v4 }
  0x65   : > { %1310 = vmatmul.mubr.bf16.gmra.mxu1 %v3042_v15  ;;  %1246 = vmatmul.mubr.bf16.gmra.mxu0 %v3089_v28  ;;  %v3113_v15 = vld [vmem:[%s3244_s26 + $0x1c8] ss:$16 sps:$4 sm:$0xff]  }
  0x66   : > { %1350 = vmatprep.mubr.bf16.mxu1 %v3050_v17  ;;  %2097 = vmatprep.mubr.bf16.mxu0 %v2532_v8  ;;  %v3116_v17 = vld [vmem:[%s3244_s26 + $0x1e8] ss:$16 sps:$4 sm:$0xff]  }
  0x67   : > { %2849 = vmatpush3.bf16.msra.mxu0 %v3132_v5 }
  0x6d   : > { %1351 = vmatmul.mubr.bf16.vlgmr.msra.gmra.mxu1 %v3048_v24 }
  0x6e   : > { %1358 = vmatprep.mubr.bf16.mxu1 %v3054_v25 }
  0x75   : > { %1359 = vmatmul.mubr.bf16.gmra.mxu1 %v3056_v31 }
  0x76   : > { %1366 = vmatprep.mubr.bf16.mxu1 %v3060_v32 }
  0x7d   : > { %1367 = vmatmul.mubr.bf16.gmra.mxu1 %v3062_v37 }
  0x7e   : > { %1374 = vmatprep.mubr.bf16.mxu1 %v3066_v38 }
  0x85   : > { %1375 = vmatmul.mubr.bf16.gmra.mxu1 %v3068_v42 }
  0x86   : > { %1382 = vmatprep.mubr.bf16.mxu1 %v3072_v43 }
  0x8d   : > { %1383 = vmatmul.mubr.bf16.gmra.mxu1 %v3074_v46 }
  0x8e   : > { %1390 = vmatprep.mubr.bf16.mxu1 %v3078_v47 }
  0x95   : > { %1391 = vmatmul.mubr.bf16.gmra.mxu1 %v3080_v50 }
  0x96   : > { %1398 = vmatprep.mubr.bf16.mxu1 %v3084_v51 }
  0x9d   : > { %1399 = vmatmul.mubr.bf16.gmra.mxu1 %v3086_v54 }
  0x9e   : > { %1406 = vmatprep.mubr.bf16.mxu1 %v3090_v55 }
  0xa5   : > { %1407 = vmatmul.mubr.bf16.gmra.mxu1 %v3092_v58 }
  0xa6   : > { %1414 = vmatprep.mubr.bf16.mxu1 %v3093_v59 }
  0xad   : > { %1415 = vmatmul.mubr.bf16.gmra.mxu1 %v3095_v62 }
  0xae   : > { %1422 = vmatprep.mubr.bf16.mxu1 %v3096_v63 }
  0xb5   : > { %1423 = vmatmul.mubr.bf16.gmra.mxu1 %v3098_v2 }
  0xb6   : > { %1430 = vmatprep.mubr.bf16.mxu1 %v3099_v3 }
  0xbd   : > { %1431 = vmatmul.mubr.bf16.gmra.mxu1 %v3101_v6 }
  0xbe   : > { %1438 = vmatprep.mubr.bf16.mxu1 %v3102_v7 }
  0xc5   : > { %1439 = vmatmul.mubr.bf16.gmra.mxu1 %v3104_v9 }
  0xc6   : > { %1446 = vmatprep.mubr.bf16.mxu1 %v3105_v10 }
  0xcd   : > { %1447 = vmatmul.mubr.bf16.gmra.mxu1 %v3107_v11 }
  0xce   : > { %1454 = vmatprep.mubr.bf16.mxu1 %v3108_v12 }
  0xd5   : > { %1455 = vmatmul.mubr.bf16.gmra.mxu1 %v3110_v13 }
  0xd6   : > { %1462 = vmatprep.mubr.bf16.mxu1 %v3111_v14 }
  0xdd   : > { %1463 = vmatmul.mubr.bf16.gmra.mxu1 %v3113_v15 }
  0xde   : > { %1470 = vmatprep.mubr.bf16.mxu1 %v3114_v16 }
  0xe5   : > { %1471 = vmatmul.mubr.bf16.gmra.mxu1 %v3116_v17 }
  0xed   : > { %v2674_v18 = vpop.f32.mrf.mxu1  ;;  %v2626_v28 = vpop.f32.mrf.mxu0 }
  0xef   : > { %v2675_v19 = vpop.f32.mrf.mxu1  ;;  %v2627_v30 = vpop.f32.mrf.mxu0 }
  0xf0   : > { %v3474_v20 = vadd.f32 %v2675_v19, %v2674_v18 }
  0xf1   : > { %v2677_v21 = vpop.f32.mrf.mxu1  ;;  %v2629_v33 = vpop.f32.mrf.mxu0 }
  0xf3   : > { %v2678_v22 = vpop.f32.mrf.mxu1  ;;  %v2630_v35 = vpop.f32.mrf.mxu0 }
  0xf4   : > { %v3476_v23 = vadd.f32 %v2678_v22, %v2677_v21  ;;  %v1613_v22 = vpop.permute.xlu0 %1612 }
  0xf5   : > { %v2680_v24 = vpop.f32.mrf.mxu1  ;;  %v3484_v38 = vpop.f32.mrf.mxu0 }
  0xf7   : > { %v2681_v25 = vpop.f32.mrf.mxu1  ;;  %v3486_v40 = vpop.f32.mrf.mxu0 }
  0xf8   : > { %v3478_v26 = vadd.f32 %v2681_v25, %v2680_v24 }
  0xf9   : > { %v2683_v27 = vpop.f32.mrf.mxu1  ;;  %v3490_v43 = vpop.f32.mrf.mxu0 }
  0xfb   : > { %v2684_v29 = vpop.f32.mrf.mxu1  ;;  %v2636_v47 = vpop.f32.mrf.mxu0 }
  0xfc   : > { %v3480_v31 = vadd.f32 %v2684_v29, %v2683_v27  ;;  %v2628_v29 = vadd.f32 %v2627_v30, %v2626_v28  ;;  %v2634_v28 = vadd.f32 %v3486_v40, %v3484_v38 }
  0xfd   : > { %v2686_v32 = vpop.f32.mrf.mxu1  ;;  %v3496_v51 = vpop.f32.mrf.mxu0 }
  0xff   : > { %v2687_v34 = vpop.f32.mrf.mxu1  ;;  %v3500_v55 = vpop.f32.mrf.mxu0 }
 0x100   : > { %v3482_v36 = vadd.f32 %v2687_v34, %v2686_v32  ;;  %v2631_v34 = vadd.f32 %v2630_v35, %v2629_v33  ;;  %v2595_v33 = vld [vmem:[%s3461_s15 + $0x8] sm:$0xff]  }
 0x101   : > { %v2689_v37 = vpop.f32.mrf.mxu1  ;;  %v3504_v59 = vpop.f32.mrf.mxu0 }
 0x103   : > { %v2690_v39 = vpop.f32.mrf.mxu1  ;;  %v3508_v63 = vpop.f32.mrf.mxu0 }
 0x104   : > { %v3488_v41 = vadd.f32 %v2690_v39, %v2689_v37 }
 0x105   : > { %v2692_v42 = vpop.f32.mrf.mxu1  ;;  %v3512_v3 = vpop.f32.mrf.mxu0 }
 0x107   : > { %v2693_v44 = vpop.f32.mrf.mxu1  ;;  %v3516_v7 = vpop.f32.mrf.mxu0 }
 0x108   : > { %v3492_v45 = vadd.f32 %v2693_v44, %v2692_v42 }
 0x109   : > { %v2695_v46 = vpop.f32.mrf.mxu1  ;;  %v3520_v11 = vpop.f32.mrf.mxu0 }
 0x10b   : > { %v2696_v48 = vpop.f32.mrf.mxu1  ;;  %v3524_v15 = vpop.f32.mrf.mxu0 }
 0x10c   : > { %v3494_v49 = vadd.f32 %v2696_v48, %v2695_v46  ;;  %v1618_v48 = vpop.permute.xlu0 %1617 }
 0x10d   : > { %v2698_v50 = vpop.f32.mrf.mxu1  ;;  %v3528_v19 = vpop.f32.mrf.mxu0 }
 0x10f   : > { %v2699_v52 = vpop.f32.mrf.mxu1  ;;  %v3530_v27 = vpop.f32.mrf.mxu0 }
 0x110   : > { %v3498_v53 = vadd.f32 %v2699_v52, %v2698_v50  ;;  %v1623_v52 = vpop.permute.xlu1 %1622 }
 0x111   : > { %v2701_v54 = vpop.f32.mrf.mxu1  ;;  %v3532_v44 = vpop.f32.mrf.mxu0 }
 0x113   : > { %v2702_v56 = vpop.f32.mrf.mxu1 }
 0x114   : > { %v3502_v57 = vadd.f32 %v2702_v56, %v2701_v54 }
 0x115   : > { %v2704_v58 = vpop.f32.mrf.mxu1 }
 0x117   : > { %v2705_v60 = vpop.f32.mrf.mxu1 }
 0x118   : > { %v3506_v61 = vadd.f32 %v2705_v60, %v2704_v58 }
 0x119   : > { %v2707_v62 = vpop.f32.mrf.mxu1 }
 0x11b   : > { %v2708_v0 = vpop.f32.mrf.mxu1 }
 0x11c   : > { %v3510_v1 = vadd.f32 %v2708_v0, %v2707_v62  ;;  %v3534_v62 = vpop.f32.mrf.mxu0  ;;  %v2637_v0 = vadd.f32 %v2636_v47, %v3490_v43  ;;  %v2596_v47 = vld [vmem:[%s3461_s15 + $0x10] sm:$0xff]  }
 0x11d   : > { %v2710_v2 = vpop.f32.mrf.mxu1 }
 0x11f   : > { %v2711_v4 = vpop.f32.mrf.mxu1 }
 0x120   : > { %v3514_v5 = vadd.f32 %v2711_v4, %v2710_v2 }
 0x121   : > { %v2713_v6 = vpop.f32.mrf.mxu1 }
 0x123   : > { %v2714_v8 = vpop.f32.mrf.mxu1 }
 0x124   : > { %v3518_v9 = vadd.f32 %v2714_v8, %v2713_v6  ;;  %v3540_v8 = vpop.f32.mrf.mxu0 }
 0x125   : > { %v2716_v10 = vpop.f32.mrf.mxu1 }
 0x126   : > { %v2657_v40 = vpop.f32.mrf.mxu0 }
 0x127   : > { %v2717_v12 = vpop.f32.mrf.mxu1 }
 0x128   : > { %v3522_v13 = vadd.f32 %v2717_v12, %v2716_v10  ;;  %v1628_v12 = vpop.permute.xlu1 %1627 }
 0x129   : > { %v2719_v14 = vpop.f32.mrf.mxu1 }
 0x12b   : > { %v2720_v16 = vpop.f32.mrf.mxu1 }
 0x12c   : > { %v3526_v17 = vadd.f32 %v2720_v16, %v2719_v14 }
 0x12d   : > { %v2738_v18 = vpop.f32.mrf.mxu1 }
 0x12f   : > { %v2739_v21 = vpop.f32.mrf.mxu1 }
 0x130   : > { %v2740_v24 = vadd.f32 %v2739_v21, %v2738_v18 }
 0x131   : > { %v2741_v25 = vpop.f32.mrf.mxu1 }
 0x132   : > { %v1353_v37 = vadd.f32 %v2740_v24, %v2628_v29 }
 0x133   : > { %v2742_v32 = vpop.f32.mrf.mxu1 }
 0x134   : > { %v2743_v39 = vadd.f32 %v2742_v32, %v2741_v25  ;;  %v1770_v54 = vmul.f32 %v1613_v22, %v1353_v37  ;;  %v2640_v22 = vadd.f32 %v3500_v55, %v3496_v51  ;;  %v2643_v25 = vadd.f32 %v3508_v63, %v3504_v59  ;;  %v2659_v37 = vpop.f32.mrf.mxu0  ;;  %v2597_v63 = vld [vmem:[%s3461_s15 + $0x18] sm:$0xff]  }
 0x135   : > { %v2744_v42 = vpop.f32.mrf.mxu1 }
 0x136   : > { %v1356_v46 = vadd.f32 %v2743_v39, %v2631_v34  ;;  %v1633_v39 = vpop.permute.xlu0 %1632 }
 0x137   : > { %v2745_v50 = vpop.f32.mrf.mxu1 }
 0x138   : > { %v1771_v56 = vmul.f32 %v1618_v48, %v1356_v46  ;;  %v2746_v58 = vadd.f32 %v2745_v50, %v2744_v42  ;;  %v1638_v46 = vpop.permute.xlu1 %1637 }
 0x139   : > { %v2747_v60 = vpop.f32.mrf.mxu1 }
 0x13a   : > { %v1898_v30 = vpack.c.bf16 %v1771_v56, %v1770_v54  ;;  %v1361_v2 = vadd.f32 %v2746_v58, %v2634_v28  ;;  %v2660_v54 = vpop.f32.mrf.mxu0  ;;  %v2646_v56 = vadd.f32 %v3516_v7, %v3512_v3 }
 0x13b   : > { %v2748_v35 = vpop.f32.mrf.mxu1 }
 0x13c   : > { %v2749_v4 = vadd.f32 %v2748_v35, %v2747_v60  ;;  %2098 = vmatmul.mubr.bf16.vlgmr.msra.gmra.mxu0 %v1898_v30  ;;  %v1772_v16 = vmul.f32 %v1623_v52, %v1361_v2  ;;  %v2649_v60 = vadd.f32 %v3524_v15, %v3520_v11  ;;  %v2662_v35 = vpop.f32.mrf.mxu0  ;;  %v2598_v15 = vld [vmem:[%s3461_s15 + $0x20] sm:$0xff]  }
 0x13d   : > { %v2750_v6 = vpop.f32.mrf.mxu1  ;;  %2105 = vmatprep.mubr.bf16.mxu0 %v2595_v33 }
 0x13e   : > { %v1364_v10 = vadd.f32 %v2749_v4, %v2637_v0  ;;  %v1643_v0 = vpop.permute.xlu0 %1642  ;;  %v1648_v4 = vpop.permute.xlu1 %1647 }
 0x13f   : > { %v2751_v14 = vpop.f32.mrf.mxu1 }
 0x140   : > { %v1773_v18 = vmul.f32 %v1628_v12, %v1364_v10  ;;  %v2752_v21 = vadd.f32 %v2751_v14, %v2750_v6  ;;  %v2663_v14 = vpop.f32.mrf.mxu0 }
 0x141   : > { %v2753_v38 = vpop.f32.mrf.mxu1 }
 0x142   : > { %v1900_v43 = vpack.c.bf16 %v1773_v18, %v1772_v16  ;;  %v1369_v29 = vadd.f32 %v2752_v21, %v2640_v22  ;;  %v2652_v16 = vadd.f32 %v3530_v27, %v3528_v19  ;;  %v2655_v21 = vadd.f32 %v3534_v62, %v3532_v44  ;;  %v2599_v44 = vld [vmem:[%s3461_s15 + $0x28] sm:$0xff]  }
 0x143   : > { %v2754_v24 = vpop.f32.mrf.mxu1 }
 0x144   : > { %v2755_v32 = vadd.f32 %v2754_v24, %v2753_v38  ;;  %2106 = vmatmul.mubr.bf16.gmra.mxu0 %v1900_v43  ;;  %v1774_v50 = vmul.f32 %v1633_v39, %v1369_v29  ;;  %v1653_v24 = vpop.permute.xlu0 %1652  ;;  %v1658_v29 = vpop.permute.xlu1 %1657 }
 0x145   : > { %v2756_v34 = vpop.f32.mrf.mxu1  ;;  %2113 = vmatprep.mubr.bf16.mxu0 %v2596_v47  ;;  %v2665_v47 = vpop.f32.mrf.mxu0 }
 0x146   : > { %v1372_v42 = vadd.f32 %v2755_v32, %v2643_v25 }
 0x147   : > { %v2757_v48 = vpop.f32.mrf.mxu1 }
 0x148   : > { %v1775_v52 = vmul.f32 %v1638_v46, %v1372_v42  ;;  %v2758_v51 = vadd.f32 %v2757_v48, %v2756_v34  ;;  %v2666_v42 = vpop.f32.mrf.mxu0  ;;  %v2658_v46 = vadd.f32 %v2657_v40, %v3540_v8  ;;  %v2664_v40 = vadd.f32 %v2663_v14, %v2662_v35 }
 0x149   : > { %v2759_v55 = vpop.f32.mrf.mxu1 }
 0x14a   : > { %v1902_v59 = vpack.c.bf16 %v1775_v52, %v1774_v50  ;;  %v1377_v28 = vadd.f32 %v2758_v51, %v2646_v56  ;;  %v2661_v50 = vadd.f32 %v2660_v54, %v2659_v37  ;;  %v2668_v56 = vpop.f32.mrf.mxu0  ;;  %v2667_v54 = vadd.f32 %v2666_v42, %v2665_v47 }
 0x14b   : > { %v2760_v58 = vpop.f32.mrf.mxu1 }
 0x14c   : > { %v2761_v30 = vadd.f32 %v2760_v58, %v2759_v55  ;;  %2114 = vmatmul.mubr.bf16.gmra.mxu0 %v1902_v59  ;;  %v1776_v10 = vmul.f32 %v1643_v0, %v1377_v28  ;;  %v1663_v59 = vpop.permute.xlu0 %1662  ;;  %v1668_v58 = vpop.permute.xlu1 %1667 }
 0x14d   : > { %v2762_v33 = vpop.f32.mrf.mxu1  ;;  %2121 = vmatprep.mubr.bf16.mxu0 %v2597_v63  ;;  %v2669_v8 = vpop.f32.mrf.mxu0 }
 0x14e   : > { %v1380_v2 = vadd.f32 %v2761_v30, %v2649_v60  ;;  %v2670_v14 = vadd.f32 %v2669_v8, %v2668_v56 }
 0x14f   : > { %v2763_v6 = vpop.f32.mrf.mxu1 }
 0x150   : > { %v1777_v12 = vmul.f32 %v1648_v4, %v1380_v2  ;;  %v2764_v3 = vadd.f32 %v2763_v6, %v2762_v33  ;;  %v2600_v4 = vld [vmem:[%s3461_s15 + $0x30] sm:$0xff]  }
 0x151   : > { %v2765_v7 = vpop.f32.mrf.mxu1 }
 0x152   : > { %v1904_v11 = vpack.c.bf16 %v1777_v12, %v1776_v10  ;;  %v1385_v38 = vadd.f32 %v2764_v3, %v2652_v16  ;;  %v2671_v12 = vpop.f32.mrf.mxu0 }
 0x153   : > { %v2766_v18 = vpop.f32.mrf.mxu1 }
 0x154   : > { %v2767_v22 = vadd.f32 %v2766_v18, %v2765_v7  ;;  %2122 = vmatmul.mubr.bf16.gmra.mxu0 %v1904_v11  ;;  %v1778_v34 = vmul.f32 %v1653_v24, %v1385_v38  ;;  %v1673_v7 = vpop.permute.xlu0 %1672  ;;  %v1678_v11 = vpop.permute.xlu1 %1677  ;;  %v2601_v24 = vld [vmem:[%s3461_s15 + $0x38] sm:$0xff]  }
 0x155   : > { %v2768_v43 = vpop.f32.mrf.mxu1  ;;  %2129 = vmatprep.mubr.bf16.mxu0 %v2598_v15 }
 0x156   : > { %v1388_v25 = vadd.f32 %v2767_v22, %v2655_v21  ;;  %v2672_v22 = vpop.f32.mrf.mxu0 }
 0x157   : > { %v2769_v32 = vpop.f32.mrf.mxu1 }
 0x158   : > { %v1779_v39 = vmul.f32 %v1658_v29, %v1388_v25  ;;  %v2770_v19 = vadd.f32 %v2769_v32, %v2768_v43  ;;  %v2673_v25 = vadd.f32 %v2672_v22, %v2671_v12 }
 0x159   : > { %v2771_v27 = vpop.f32.mrf.mxu1 }
 0x15a   : > { %v1906_v48 = vpack.c.bf16 %v1779_v39, %v1778_v34  ;;  %v1393_v52 = vadd.f32 %v2770_v19, %v2658_v46  ;;  %v1683_v39 = vpop.permute.xlu0 %1682 }
 0x15b   : > { %v2772_v62 = vpop.f32.mrf.mxu1 }
 0x15c   : > { %v2773_v51 = vadd.f32 %v2772_v62, %v2771_v27  ;;  %2130 = vmatmul.mubr.bf16.gmra.mxu0 %v1906_v48  ;;  %v1780_v28 = vmul.f32 %v1663_v59, %v1393_v52  ;;  %v1688_v27 = vpop.permute.xlu1 %1687  ;;  %v2602_v52 = vld [vmem:[%s3461_s15 + $0x40] sm:$0xff]  }
 0x15d   : > { %v2774_v55 = vpop.f32.mrf.mxu1  ;;  %2137 = vmatprep.mubr.bf16.mxu0 %v2599_v44 }
 0x15e   : > { %v1396_v63 = vadd.f32 %v2773_v51, %v2661_v50 }
 0x15f   : > { %v2775_v60 = vpop.f32.mrf.mxu1 }
 0x160   : > { %v1781_v30 = vmul.f32 %v1668_v58, %v1396_v63  ;;  %v2776_v33 = vadd.f32 %v2775_v60, %v2774_v55  ;;  %v1693_v63 = vpop.permute.xlu0 %1692  ;;  %v1698_v60 = vpop.permute.xlu1 %1697 }
 0x161   : > { %v2777_v0 = vpop.f32.mrf.mxu1 }
 0x162   : > { %v1908_v2 = vpack.c.bf16 %v1781_v30, %v1780_v28  ;;  %v1401_v6 = vadd.f32 %v2776_v33, %v2664_v40 }
 0x163   : > { %v2778_v37 = vpop.f32.mrf.mxu1 }
 0x164   : > { %v2779_v10 = vadd.f32 %v2778_v37, %v2777_v0  ;;  %2138 = vmatmul.mubr.bf16.gmra.mxu0 %v1908_v2  ;;  %v1782_v18 = vmul.f32 %v1673_v7, %v1401_v6  ;;  %v2603_v2 = vld [vmem:[%s3461_s15 + $0x48] sm:$0xff]   ;;  %v1703_v6 = vpop.permute.xlu0 %1702 }
 0x165   : > { %v2780_v3 = vpop.f32.mrf.mxu1  ;;  %2145 = vmatprep.mubr.bf16.mxu0 %v2600_v4 }
 0x166   : > { %v1404_v16 = vadd.f32 %v2779_v10, %v2667_v54 }
 0x167   : > { %v2781_v15 = vpop.f32.mrf.mxu1 }
 0x168   : > { %v1783_v21 = vmul.f32 %v1678_v11, %v1404_v16  ;;  %v2782_v38 = vadd.f32 %v2781_v15, %v2780_v3 }
 0x169   : > { %v2783_v35 = vpop.f32.mrf.mxu1 }
 0x16a   : > { %v1910_v43 = vpack.c.bf16 %v1783_v21, %v1782_v18  ;;  %v1409_v29 = vadd.f32 %v2782_v38, %v2670_v14  ;;  %v2604_v18 = vld [vmem:[%s3461_s15 + $0x50] sm:$0xff]  }
 0x16b   : > { %v2784_v47 = vpop.f32.mrf.mxu1 }
 0x16c   : > { %v2785_v32 = vadd.f32 %v2784_v47, %v2783_v35  ;;  %2146 = vmatmul.mubr.bf16.gmra.mxu0 %v1910_v43  ;;  %v1784_v46 = vmul.f32 %v1683_v39, %v1409_v29  ;;  %v1713_v35 = vpop.permute.xlu0 %1712 }
 0x16d   : > { %v2786_v34 = vpop.f32.mrf.mxu1  ;;  %2153 = vmatprep.mubr.bf16.mxu0 %v2601_v24 }
 0x16e   : > { %v1412_v19 = vadd.f32 %v2785_v32, %v2673_v25 }
 0x16f   : > { %v2787_v42 = vpop.f32.mrf.mxu1 }
 0x170   : > { %v1785_v48 = vmul.f32 %v1688_v27, %v1412_v19  ;;  %v2788_v44 = vadd.f32 %v2787_v42, %v2786_v34  ;;  %v2605_v34 = vld [vmem:[%s3461_s15 + $0x58] sm:$0xff]   ;;  %v1723_v42 = vpop.permute.xlu0 %1722 }
 0x171   : > { %v2789_v62 = vpop.f32.mrf.mxu1 }
 0x172   : > { %v1912_v50 = vpack.c.bf16 %v1785_v48, %v1784_v46  ;;  %v1417_v55 = vadd.f32 %v2788_v44, %v3474_v20 }
 0x173   : > { %v2790_v51 = vpop.f32.mrf.mxu1 }
 0x174   : > { %v2791_v56 = vadd.f32 %v2790_v51, %v2789_v62  ;;  %2154 = vmatmul.mubr.bf16.gmra.mxu0 %v1912_v50  ;;  %v1786_v30 = vmul.f32 %v1693_v63, %v1417_v55  ;;  %v2606_v55 = vld [vmem:[%s3461_s15 + $0x60] sm:$0xff]  }
 0x175   : > { %v2792_v59 = vpop.f32.mrf.mxu1  ;;  %2161 = vmatprep.mubr.bf16.mxu0 %v2602_v52 }
 0x176   : > { %v1420_v58 = vadd.f32 %v2791_v56, %v3476_v23  ;;  %v1708_v23 = vpop.permute.xlu1 %1707 }
 0x177   : > { %v2793_v28 = vpop.f32.mrf.mxu1 }
 0x178   : > { %v1787_v33 = vmul.f32 %v1698_v60, %v1420_v58  ;;  %v2794_v0 = vadd.f32 %v2793_v28, %v2792_v59  ;;  %v1733_v58 = vpop.permute.xlu0 %1732 }
 0x179   : > { %v2795_v8 = vpop.f32.mrf.mxu1 }
 0x17a   : > { %v1914_v40 = vpack.c.bf16 %v1787_v33, %v1786_v30  ;;  %v1425_v37 = vadd.f32 %v2794_v0, %v3478_v26 }
 0x17b   : > { %v2796_v4 = vpop.f32.mrf.mxu1 }
 0x17c   : > { %v2797_v20 = vadd.f32 %v2796_v4, %v2795_v8  ;;  %2162 = vmatmul.mubr.bf16.gmra.mxu0 %v1914_v40  ;;  %v1788_v3 = vmul.f32 %v1703_v6, %v1425_v37 }
 0x17d   : > { %v2798_v54 = vpop.f32.mrf.mxu1  ;;  %2169 = vmatprep.mubr.bf16.mxu0 %v2603_v2  ;;  %v2607_v2 = vld [vmem:[%s3461_s15 + $0x68] sm:$0xff]  }
 0x17e   : > { %v1428_v10 = vadd.f32 %v2797_v20, %v3480_v31  ;;  %v1718_v31 = vpop.permute.xlu1 %1717 }
 0x17f   : > { %v2799_v12 = vpop.f32.mrf.mxu1 }
 0x180   : > { %v1789_v7 = vmul.f32 %v1708_v23, %v1428_v10  ;;  %v2800_v16 = vadd.f32 %v2799_v12, %v2798_v54  ;;  %v1743_v54 = vpop.permute.xlu0 %1742 }
 0x181   : > { %v2801_v11 = vpop.f32.mrf.mxu1 }
 0x182   : > { %v1916_v15 = vpack.c.bf16 %v1789_v7, %v1788_v3  ;;  %v1433_v38 = vadd.f32 %v2800_v16, %v3482_v36 }
 0x183   : > { %v2802_v21 = vpop.f32.mrf.mxu1 }
 0x184   : > { %v2803_v26 = vadd.f32 %v2802_v21, %v2801_v11  ;;  %2170 = vmatmul.mubr.bf16.gmra.mxu0 %v1916_v15  ;;  %v1790_v24 = vmul.f32 %v1713_v35, %v1433_v38  ;;  %v2608_v11 = vld [vmem:[%s3461_s15 + $0x70] sm:$0xff]   ;;  %v1753_v38 = vpop.permute.xlu0 %1752 }
 0x185   : > { %v2804_v22 = vpop.f32.mrf.mxu1  ;;  %2177 = vmatprep.mubr.bf16.mxu0 %v2604_v18 }
 0x186   : > { %v1436_v14 = vadd.f32 %v2803_v26, %v3488_v41  ;;  %v1728_v41 = vpop.permute.xlu1 %1727 }
 0x187   : > { %v2805_v43 = vpop.f32.mrf.mxu1 }
 0x188   : > { %v1791_v47 = vmul.f32 %v1718_v31, %v1436_v14  ;;  %v2806_v25 = vadd.f32 %v2805_v43, %v2804_v22 }
 0x189   : > { %v2807_v29 = vpop.f32.mrf.mxu1 }
 0x18a   : > { %v1918_v32 = vpack.c.bf16 %v1791_v47, %v1790_v24  ;;  %v1441_v19 = vadd.f32 %v2806_v25, %v3492_v45  ;;  %v2609_v47 = vld [vmem:[%s3461_s15 + $0x78] sm:$0xff]  }
 0x18b   : > { %v2808_v39 = vpop.f32.mrf.mxu1 }
 0x18c   : > { %v2809_v36 = vadd.f32 %v2808_v39, %v2807_v29  ;;  %2178 = vmatmul.mubr.bf16.gmra.mxu0 %v1918_v32  ;;  %v1792_v44 = vmul.f32 %v1723_v42, %v1441_v19  ;;  %v3588_v42 = vld [vmem:[%s3675_s5] ss:$0 sm:$0xff] }
 0x18d   : > { %v2810_v27 = vpop.f32.mrf.mxu1  ;;  %2185 = vmatprep.mubr.bf16.mxu0 %v2605_v34  ;;  %v1763_v34 = vpop.permute.xlu0 %1762 }
 0x18e   : > { %v1444_v46 = vadd.f32 %v2809_v36, %v3494_v49  ;;  %v1738_v49 = vpop.permute.xlu1 %1737 }
 0x18f   : > { %v2811_v48 = vpop.f32.mrf.mxu1 }
 0x190   : > { %v1793_v62 = vmul.f32 %v1728_v41, %v1444_v46  ;;  %v2812_v50 = vadd.f32 %v2811_v48, %v2810_v27 }
 0x191   : > { %v2813_v52 = vpop.f32.mrf.mxu1 }
 0x192   : > { %v1920_v51 = vpack.c.bf16 %v1793_v62, %v1792_v44  ;;  %v1449_v59 = vadd.f32 %v2812_v50, %v3498_v53 }
 0x193   : > { %v2814_v56 = vpop.f32.mrf.mxu1 }
 0x194   : > { %v2815_v45 = vadd.f32 %v2814_v56, %v2813_v52  ;;  %2186 = vmatmul.mubr.bf16.gmra.mxu0 %v1920_v51  ;;  %v1794_v30 = vmul.f32 %v1733_v58, %v1449_v59 }
 0x195   : > { %v2816_v63 = vpop.f32.mrf.mxu1  ;;  %2193 = vmatprep.mubr.bf16.mxu0 %v2606_v55 }
 0x196   : > { %v1452_v60 = vadd.f32 %v2815_v45, %v3502_v57  ;;  %v1748_v57 = vpop.permute.xlu1 %1747 }
 0x197   : > { %v2817_v28 = vpop.f32.mrf.mxu1 }
 0x198   : > { %v1795_v33 = vmul.f32 %v1738_v49, %v1452_v60  ;;  %v2818_v0 = vadd.f32 %v2817_v28, %v2816_v63 }
 0x199   : > { %v2819_v8 = vpop.f32.mrf.mxu1 }
 0x19a   : > { %v1922_v40 = vpack.c.bf16 %v1795_v33, %v1794_v30  ;;  %v1457_v37 = vadd.f32 %v2818_v0, %v3506_v61 }
 0x19b   : > { %v2820_v4 = vpop.f32.mrf.mxu1 }
 0x19c   : > { %v2821_v53 = vadd.f32 %v2820_v4, %v2819_v8  ;;  %2194 = vmatmul.mubr.bf16.gmra.mxu0 %v1922_v40  ;;  %v1796_v23 = vmul.f32 %v1743_v54, %v1457_v37 }
 0x19d   : > { %v2822_v20 = vpop.f32.mrf.mxu1  ;;  %2201 = vmatprep.mubr.bf16.mxu0 %v2607_v2 }
 0x19e   : > { %v1460_v6 = vadd.f32 %v2821_v53, %v3510_v1  ;;  %v1758_v1 = vpop.permute.xlu1 %1757 }
 0x19f   : > { %v2823_v10 = vpop.f32.mrf.mxu1 }
 0x1a0   : > { %v1797_v12 = vmul.f32 %v1748_v57, %v1460_v6  ;;  %v2824_v3 = vadd.f32 %v2823_v10, %v2822_v20 }
 0x1a1   : > { %v2825_v7 = vpop.f32.mrf.mxu1 }
 0x1a2   : > { %v1924_v16 = vpack.c.bf16 %v1797_v12, %v1796_v23  ;;  %v1465_v18 = vadd.f32 %v2824_v3, %v3514_v5  ;;  %v1768_v39 = vpop.permute.xlu1 %1767 }
 0x1a3   : > { %v2826_v15 = vpop.f32.mrf.mxu1 }
 0x1a4   : > { %v2827_v61 = vadd.f32 %v2826_v15, %v2825_v7  ;;  %2202 = vmatmul.mubr.bf16.gmra.mxu0 %v1924_v16  ;;  %v1798_v35 = vmul.f32 %v1753_v38, %v1465_v18 }
 0x1a5   : > { %v2828_v21 = vpop.f32.mrf.mxu1  ;;  %2209 = vmatprep.mubr.bf16.mxu0 %v2608_v11 }
 0x1a6   : > { %v1468_v26 = vadd.f32 %v2827_v61, %v3518_v9 }
 0x1a7   : > { %v2829_v22 = vpop.f32.mrf.mxu1 }
 0x1a8   : > { %v1799_v14 = vmul.f32 %v1758_v1, %v1468_v26  ;;  %v2830_v31 = vadd.f32 %v2829_v22, %v2828_v21 }
 0x1a9   : > { %v2831_v43 = vpop.f32.mrf.mxu1 }
 0x1aa   : > { %v1926_v24 = vpack.c.bf16 %v1799_v14, %v1798_v35  ;;  %v1473_v29 = vadd.f32 %v2830_v31, %v3522_v13 }
 0x1ab   : > { %v2832_v25 = vpop.f32.mrf.mxu1 }
 0x1ac   : > { %v2833_v32 = vadd.f32 %v2832_v25, %v2831_v43  ;;  %2210 = vmatmul.mubr.bf16.gmra.mxu0 %v1926_v24  ;;  %v1800_v9 = vmul.f32 %v1763_v34, %v1473_v29 }
 0x1ad   : > { %2217 = vmatprep.mubr.bf16.mxu0 %v2609_v47 }
 0x1ae   : > { %v1476_v5 = vadd.f32 %v2833_v32, %v3526_v17 }
 0x1b0   : > { %v1801_v19 = vmul.f32 %v1768_v39, %v1476_v5 }
 0x1b2   : > { %v1928_v36 = vpack.c.bf16 %v1801_v19, %v1800_v9 }
 0x1b4   : > { %2218 = vmatmul.mubr.bf16.gmra.mxu0 %v1928_v36 }
 0x1fc   : > { %v2850_v27 = vpop.f32.mrf.mxu0 }
 0x1fe   : > { %v2851_v46 = vpop.f32.mrf.mxu0 }
 0x1ff   : > { %v2852_v13 = vadd.f32 %v2851_v46, %v2850_v27 }
 0x200   : > { %v2853_v41 = vpop.f32.mrf.mxu0 }
 0x201   : > { %v2100_v48 = vadd.f32 %v2852_v13, %v3588_v42 }
 0x202   : > { %v2854_v17 = vpop.f32.mrf.mxu0 }
 0x203   : > { %v2226_v44 = vmax.f32 %v2100_v48, 0.0  ;;  %v2855_v62 = vadd.f32 %v2854_v17, %v2853_v41 }
 0x204   : > { %v2856_v50 = vpop.f32.mrf.mxu0 }
 0x205   : > { %2258 = vst [vmem:[%s3596_s20] sm:$0xff] %v2226_v44  ;;  %v2103_v52 = vadd.f32 %v2855_v62, %v3588_v42 }
 0x206   : > { %v2857_v51 = vpop.f32.mrf.mxu0 }
 0x207   : > { %v2227_v55 = vmax.f32 %v2103_v52, 0.0  ;;  %v2858_v56 = vadd.f32 %v2857_v51, %v2856_v50 }
 0x208   : > { %v2859_v59 = vpop.f32.mrf.mxu0 }
 0x209   : > { %2259 = vst [vmem:[%s3596_s20 + $0x8] sm:$0xff] %v2227_v55  ;;  %v2108_v45 = vadd.f32 %v2858_v56, %v3588_v42 }
 0x20a   : > { %v2860_v63 = vpop.f32.mrf.mxu0 }
 0x20b   : > { %v2228_v58 = vmax.f32 %v2108_v45, 0.0  ;;  %v2861_v60 = vadd.f32 %v2860_v63, %v2859_v59 }
 0x20c   : > { %v2862_v49 = vpop.f32.mrf.mxu0 }
 0x20d   : > { %2260 = vst [vmem:[%s3596_s20 + $0x10] sm:$0xff] %v2228_v58  ;;  %v2111_v28 = vadd.f32 %v2861_v60, %v3588_v42 }
 0x20e   : > { %v2863_v30 = vpop.f32.mrf.mxu0 }
 0x20f   : > { %v2229_v33 = vmax.f32 %v2111_v28, 0.0  ;;  %v2864_v0 = vadd.f32 %v2863_v30, %v2862_v49 }
 0x210   : > { %v2865_v8 = vpop.f32.mrf.mxu0 }
 0x211   : > { %2261 = vst [vmem:[%s3596_s20 + $0x18] sm:$0xff] %v2229_v33  ;;  %v2116_v40 = vadd.f32 %v2864_v0, %v3588_v42 }
 0x212   : > { %v2866_v2 = vpop.f32.mrf.mxu0 }
 0x213   : > { %v2230_v4 = vmax.f32 %v2116_v40, 0.0  ;;  %v2867_v37 = vadd.f32 %v2866_v2, %v2865_v8 }
 0x214   : > { %v2868_v53 = vpop.f32.mrf.mxu0 }
 0x215   : > { %2262 = vst [vmem:[%s3596_s20 + $0x20] sm:$0xff] %v2230_v4  ;;  %v2119_v20 = vadd.f32 %v2867_v37, %v3588_v42 }
 0x216   : > { %v2869_v54 = vpop.f32.mrf.mxu0 }
 0x217   : > { %v2231_v6 = vmax.f32 %v2119_v20, 0.0  ;;  %v2870_v57 = vadd.f32 %v2869_v54, %v2868_v53 }
 0x218   : > { %v2871_v10 = vpop.f32.mrf.mxu0 }
 0x219   : > { %2263 = vst [vmem:[%s3596_s20 + $0x28] sm:$0xff] %v2231_v6  ;;  %v2124_v23 = vadd.f32 %v2870_v57, %v3588_v42 }
 0x21a   : > { %v2872_v12 = vpop.f32.mrf.mxu0 }
 0x21b   : > { %v2232_v3 = vmax.f32 %v2124_v23, 0.0  ;;  %v2873_v7 = vadd.f32 %v2872_v12, %v2871_v10 }
 0x21c   : > { %v2874_v16 = vpop.f32.mrf.mxu0 }
 0x21d   : > { %2264 = vst [vmem:[%s3596_s20 + $0x30] sm:$0xff] %v2232_v3  ;;  %v2127_v11 = vadd.f32 %v2873_v7, %v3588_v42 }
 0x21e   : > { %v2875_v15 = vpop.f32.mrf.mxu0 }
 0x21f   : > { %v2233_v18 = vmax.f32 %v2127_v11, 0.0  ;;  %v2876_v61 = vadd.f32 %v2875_v15, %v2874_v16 }
 0x220   : > { %v2877_v21 = vpop.f32.mrf.mxu0 }
 0x221   : > { %2265 = vst [vmem:[%s3596_s20 + $0x38] sm:$0xff] %v2233_v18  ;;  %v2132_v38 = vadd.f32 %v2876_v61, %v3588_v42 }
 0x222   : > { %v2878_v26 = vpop.f32.mrf.mxu0 }
 0x223   : > { %v2234_v1 = vmax.f32 %v2132_v38, 0.0  ;;  %v2879_v22 = vadd.f32 %v2878_v26, %v2877_v21 }
 0x224   : > { %v2880_v35 = vpop.f32.mrf.mxu0 }
 0x225   : > { %2266 = vst [vmem:[%s3596_s20 + $0x40] sm:$0xff] %v2234_v1  ;;  %v2135_v14 = vadd.f32 %v2879_v22, %v3588_v42 }
 0x226   : > { %v2881_v31 = vpop.f32.mrf.mxu0 }
 0x227   : > { %v2235_v43 = vmax.f32 %v2135_v14, 0.0  ;;  %v2882_v24 = vadd.f32 %v2881_v31, %v2880_v35 }
 0x228   : > { %v2883_v47 = vpop.f32.mrf.mxu0 }
 0x229   : > { %2267 = vst [vmem:[%s3596_s20 + $0x48] sm:$0xff] %v2235_v43  ;;  %v2140_v25 = vadd.f32 %v2882_v24, %v3588_v42 }
 0x22a   : > { %v2884_v29 = vpop.f32.mrf.mxu0 }
 0x22b   : > { %v2236_v32 = vmax.f32 %v2140_v25, 0.0  ;;  %v2885_v5 = vadd.f32 %v2884_v29, %v2883_v47 }
 0x22c   : > { %v2886_v34 = vpop.f32.mrf.mxu0 }
 0x22d   : > { %2268 = vst [vmem:[%s3596_s20 + $0x50] sm:$0xff] %v2236_v32  ;;  %v2143_v39 = vadd.f32 %v2885_v5, %v3588_v42 }
 0x22e   : > { %v2887_v9 = vpop.f32.mrf.mxu0 }
 0x22f   : > { %v2237_v19 = vmax.f32 %v2143_v39, 0.0  ;;  %v2888_v36 = vadd.f32 %v2887_v9, %v2886_v34 }
 0x230   : > { %v2889_v27 = vpop.f32.mrf.mxu0 }
 0x231   : > { %2269 = vst [vmem:[%s3596_s20 + $0x58] sm:$0xff] %v2237_v19  ;;  %v2148_v46 = vadd.f32 %v2888_v36, %v3588_v42 }
 0x232   : > { %v2890_v13 = vpop.f32.mrf.mxu0 }
 0x233   : > { %v2238_v41 = vmax.f32 %v2148_v46, 0.0  ;;  %v2891_v48 = vadd.f32 %v2890_v13, %v2889_v27 }
 0x234   : > { %v2892_v17 = vpop.f32.mrf.mxu0 }
 0x235   : > { %2270 = vst [vmem:[%s3596_s20 + $0x60] sm:$0xff] %v2238_v41  ;;  %v2151_v44 = vadd.f32 %v2891_v48, %v3588_v42 }
 0x236   : > { %v2893_v62 = vpop.f32.mrf.mxu0 }
 0x237   : > { %v2239_v50 = vmax.f32 %v2151_v44, 0.0  ;;  %v2894_v52 = vadd.f32 %v2893_v62, %v2892_v17 }
 0x238   : > { %v2895_v51 = vpop.f32.mrf.mxu0 }
 0x239   : > { %2271 = vst [vmem:[%s3596_s20 + $0x68] sm:$0xff] %v2239_v50  ;;  %v2156_v55 = vadd.f32 %v2894_v52, %v3588_v42 }
 0x23a   : > { %v2896_v56 = vpop.f32.mrf.mxu0 }
 0x23b   : > { %v2240_v59 = vmax.f32 %v2156_v55, 0.0  ;;  %v2897_v45 = vadd.f32 %v2896_v56, %v2895_v51 }
 0x23c   : > { %v2898_v63 = vpop.f32.mrf.mxu0 }
 0x23d   : > { %2272 = vst [vmem:[%s3596_s20 + $0x70] sm:$0xff] %v2240_v59  ;;  %v2159_v58 = vadd.f32 %v2897_v45, %v3588_v42 }
 0x23e   : > { %v2899_v60 = vpop.f32.mrf.mxu0 }
 0x23f   : > { %v2241_v49 = vmax.f32 %v2159_v58, 0.0  ;;  %v2900_v28 = vadd.f32 %v2899_v60, %v2898_v63 }
 0x240   : > { %v2901_v30 = vpop.f32.mrf.mxu0 }
 0x241   : > { %2273 = vst [vmem:[%s3596_s20 + $0x78] sm:$0xff] %v2241_v49  ;;  %v2164_v33 = vadd.f32 %v2900_v28, %v3588_v42 }
 0x242   : > { %v2902_v0 = vpop.f32.mrf.mxu0 }
 0x243   : > { %v2242_v8 = vmax.f32 %v2164_v33, 0.0  ;;  %v2903_v40 = vadd.f32 %v2902_v0, %v2901_v30 }
 0x244   : > { %v2904_v2 = vpop.f32.mrf.mxu0 }
 0x245   : > { %2274 = vst [vmem:[%s3596_s20 + $0x80] sm:$0xff] %v2242_v8  ;;  %v2167_v4 = vadd.f32 %v2903_v40, %v3588_v42 }
 0x246   : > { %v2905_v37 = vpop.f32.mrf.mxu0 }
 0x247   : > { %v2243_v53 = vmax.f32 %v2167_v4, 0.0  ;;  %v2906_v20 = vadd.f32 %v2905_v37, %v2904_v2 }
 0x248   : > { %v2907_v54 = vpop.f32.mrf.mxu0 }
 0x249   : > { %2275 = vst [vmem:[%s3596_s20 + $0x88] sm:$0xff] %v2243_v53  ;;  %v2172_v6 = vadd.f32 %v2906_v20, %v3588_v42 }
 0x24a   : > { %v2908_v57 = vpop.f32.mrf.mxu0 }
 0x24b   : > { %v2244_v10 = vmax.f32 %v2172_v6, 0.0  ;;  %v2909_v23 = vadd.f32 %v2908_v57, %v2907_v54 }
 0x24c   : > { %v2910_v12 = vpop.f32.mrf.mxu0 }
 0x24d   : > { %2276 = vst [vmem:[%s3596_s20 + $0x90] sm:$0xff] %v2244_v10  ;;  %v2175_v3 = vadd.f32 %v2909_v23, %v3588_v42 }
 0x24e   : > { %v2911_v7 = vpop.f32.mrf.mxu0 }
 0x24f   : > { %v2245_v16 = vmax.f32 %v2175_v3, 0.0  ;;  %v2912_v11 = vadd.f32 %v2911_v7, %v2910_v12 }
 0x250   : > { %v2913_v15 = vpop.f32.mrf.mxu0 }
 0x251   : > { %2277 = vst [vmem:[%s3596_s20 + $0x98] sm:$0xff] %v2245_v16  ;;  %v2180_v18 = vadd.f32 %v2912_v11, %v3588_v42 }
 0x252   : > { %v2914_v61 = vpop.f32.mrf.mxu0 }
 0x253   : > { %v2246_v21 = vmax.f32 %v2180_v18, 0.0  ;;  %v2915_v38 = vadd.f32 %v2914_v61, %v2913_v15 }
 0x254   : > { %v2916_v26 = vpop.f32.mrf.mxu0 }
 0x255   : > { %2278 = vst [vmem:[%s3596_s20 + $0xa0] sm:$0xff] %v2246_v21  ;;  %v2183_v1 = vadd.f32 %v2915_v38, %v3588_v42 }
 0x256   : > { %v2917_v22 = vpop.f32.mrf.mxu0 }
 0x257   : > { %v2247_v35 = vmax.f32 %v2183_v1, 0.0  ;;  %v2918_v14 = vadd.f32 %v2917_v22, %v2916_v26 }
 0x258   : > { %v2919_v31 = vpop.f32.mrf.mxu0 }
 0x259   : > { %2279 = vst [vmem:[%s3596_s20 + $0xa8] sm:$0xff] %v2247_v35  ;;  %v2188_v43 = vadd.f32 %v2918_v14, %v3588_v42 }
 0x25a   : > { %v2920_v24 = vpop.f32.mrf.mxu0 }
 0x25b   : > { %v2248_v47 = vmax.f32 %v2188_v43, 0.0  ;;  %v2921_v25 = vadd.f32 %v2920_v24, %v2919_v31 }
 0x25c   : > { %v2922_v29 = vpop.f32.mrf.mxu0 }
 0x25d   : > { %2280 = vst [vmem:[%s3596_s20 + $0xb0] sm:$0xff] %v2248_v47  ;;  %v2191_v32 = vadd.f32 %v2921_v25, %v3588_v42 }
 0x25e   : > { %v2923_v5 = vpop.f32.mrf.mxu0 }
 0x25f   : > { %v2249_v34 = vmax.f32 %v2191_v32, 0.0  ;;  %v2924_v39 = vadd.f32 %v2923_v5, %v2922_v29 }
 0x260   : > { %v2925_v9 = vpop.f32.mrf.mxu0 }
 0x261   : > { %2281 = vst [vmem:[%s3596_s20 + $0xb8] sm:$0xff] %v2249_v34  ;;  %v2196_v19 = vadd.f32 %v2924_v39, %v3588_v42 }
 0x262   : > { %v2926_v36 = vpop.f32.mrf.mxu0 }
 0x263   : > { %v2250_v27 = vmax.f32 %v2196_v19, 0.0  ;;  %v2927_v46 = vadd.f32 %v2926_v36, %v2925_v9 }
 0x264   : > { %v2928_v13 = vpop.f32.mrf.mxu0 }
 0x265   : > { %2282 = vst [vmem:[%s3596_s20 + $0xc0] sm:$0xff] %v2250_v27  ;;  %v2199_v41 = vadd.f32 %v2927_v46, %v3588_v42 }
 0x266   : > { %v2929_v48 = vpop.f32.mrf.mxu0 }
 0x267   : > { %v2251_v17 = vmax.f32 %v2199_v41, 0.0  ;;  %v2930_v44 = vadd.f32 %v2929_v48, %v2928_v13 }
 0x268   : > { %v2931_v62 = vpop.f32.mrf.mxu0 }
 0x269   : > { %2283 = vst [vmem:[%s3596_s20 + $0xc8] sm:$0xff] %v2251_v17  ;;  %v2204_v50 = vadd.f32 %v2930_v44, %v3588_v42 }
 0x26a   : > { %v2932_v52 = vpop.f32.mrf.mxu0 }
 0x26b   : > { %v2252_v51 = vmax.f32 %v2204_v50, 0.0  ;;  %v2933_v55 = vadd.f32 %v2932_v52, %v2931_v62 }
 0x26c   : > { %v2934_v56 = vpop.f32.mrf.mxu0 }
 0x26d   : > { %2284 = vst [vmem:[%s3596_s20 + $0xd0] sm:$0xff] %v2252_v51  ;;  %v2207_v59 = vadd.f32 %v2933_v55, %v3588_v42 }
 0x26e   : > { %v2935_v45 = vpop.f32.mrf.mxu0 }
 0x26f   : > { %v2253_v63 = vmax.f32 %v2207_v59, 0.0  ;;  %v2936_v58 = vadd.f32 %v2935_v45, %v2934_v56 }
 0x270   : > { %v2937_v60 = vpop.f32.mrf.mxu0 }
 0x271   : > { %2285 = vst [vmem:[%s3596_s20 + $0xd8] sm:$0xff] %v2253_v63  ;;  %v2212_v49 = vadd.f32 %v2936_v58, %v3588_v42 }
 0x272   : > { %v2938_v28 = vpop.f32.mrf.mxu0 }
 0x273   : > { %v2254_v30 = vmax.f32 %v2212_v49, 0.0  ;;  %v2939_v33 = vadd.f32 %v2938_v28, %v2937_v60 }
 0x274   : > { %v2940_v0 = vpop.f32.mrf.mxu0 }
 0x275   : > { %2286 = vst [vmem:[%s3596_s20 + $0xe0] sm:$0xff] %v2254_v30  ;;  %v2215_v8 = vadd.f32 %v2939_v33, %v3588_v42 }
 0x276   : > { %v2941_v40 = vpop.f32.mrf.mxu0 }
 0x277   : > { %v2255_v2 = vmax.f32 %v2215_v8, 0.0  ;;  %v2942_v4 = vadd.f32 %v2941_v40, %v2940_v0 }
 0x278   : > { %v2943_v37 = vpop.f32.mrf.mxu0 }
 0x279   : > { %2287 = vst [vmem:[%s3596_s20 + $0xe8] sm:$0xff] %v2255_v2  ;;  %v2220_v53 = vadd.f32 %v2942_v4, %v3588_v42 }
 0x27a   : > { %v2944_v20 = vpop.f32.mrf.mxu0 }
 0x27b   : > { %v2256_v54 = vmax.f32 %v2220_v53, 0.0  ;;  %v2945_v6 = vadd.f32 %v2944_v20, %v2943_v37 }
 0x27d   : > { %2288 = vst [vmem:[%s3596_s20 + $0xf0] sm:$0xff] %v2256_v54  ;;  %v2223_v57 = vadd.f32 %v2945_v6, %v3588_v42 }
 0x27f   : > { %v2257_v10 = vmax.f32 %v2223_v57, 0.0 }
 0x281   : > { %2289 = vst [vmem:[%s3596_s20 + $0xf8] sm:$0xff] %v2257_v10 }
 0x282 PF: > { %s16_s23 = sadd.s32 1, %s3155_s23   ;;  %s3677_s21 = smov %s3151_s22 }
 0x283   : > { %p13_p5 = scmp.ge.s32.totalorder %s16_s23, 4   ;;  %s3678_s22 = smov %s3680_s24 }
 0x285   :  { %15 = sbr.rel (!%p13_p5) target bundleno = 2 (0x2), region = 91 }

// kernel: sage_forward.2
= control target key start
LH: loop header
LB: loop body
LE: loop exit
PB: predicated region body
PF: predicated region fallthrough
CT: control target
= control target key end

     0   :  { %s3480_s21 = smov 0   ;;  %s3482_s22 = smov 0   ;;  %s3941_s0 = inlined_call_operand.vmem [shape: bf16[512,512], index: 0, kind: input, shape index: {}]   ;;  %s3942_s1 = inlined_call_operand.vmem [shape: bf16[512,128], index: 1, kind: input, shape index: {}, may-alias: {1,2}]   ;;  %s3943_s2 = inlined_call_operand.vmem [shape: bf16[512,128], index: 2, kind: input, shape index: {}, may-alias: {1,2}]   ;;  %s3944_s3 = inlined_call_operand.vmem [shape: f32[512,1], index: 3, kind: input, shape index: {}]   ;;  %s3945_s4 = inlined_call_operand.vmem [shape: bf16[256,128], index: 4, kind: input, shape index: {}]   ;;  %s3946_s5 = inlined_call_operand.vmem [shape: f32[1,128], index: 5, kind: input, shape index: {}]   ;;  %s3947_s6 = inlined_call_operand.vmem [shape: bf16[512,128], index: 6, kind: output, shape index: {}]  }
   0x1   :  { %s3484_s23 = smov 0  }
   0x2 LB: > { %s28_s24 = sadd.s32 1, %s3438_s22  ;;  %p2533_p0 = scmp.ge.s32.totalorder %s3442_s23, 1  ;;  %s3442_s23 = sphi %s3484_s23, %s16_s23   ;;  %s3438_s22 = sphi %s3482_s22, %s3949_s22   ;;  %s3434_s21 = sphi %s3480_s21, %s3948_s21  }
   0x3   : > { %p30_p1 = scmp.ge.s32.totalorder %s28_s24, 2  ;;  %p266_p2 = scmp.lt.s32.totalorder %s3442_s23, 3 }
   0x5   : > { %s3951_s24 = smov (%p30_p1, %s28_s24), 0  ;;  %p267_p3 = pnand %p2533_p0, %p266_p2 }
   0x6   : > { %s2534_s27 = sshll.u32 (!%p267_p3), %s3434_s21, 5 }
   0x7   : > { %270 = sbr.rel (%p267_p3) target bundleno = 644 (0x284), region = 44  ;;  %p318_p4 = scmp.lt.s32.totalorder (!%p267_p3), %s2534_s27, 63 }
   0xc   : > { %v3276_v0 = vld [vmem:[%s3942_s1 + $0x78] sm:$0xff]   ;;  %v3278_v2 = vld [vmem:[%s3942_s1 + $0x70] sm:$0xff]   ;;  %v3280_v4 = vld [vmem:[%s3942_s1 + $0x68] sm:$0xff]   ;;  %v3444_v5 = vmov 0   ;;  %s3953_s27 = smov (!%p318_p4, %s2534_s27), 63 }
   0xd   : > { %v3277_v1 = vld [vmem:[%s3942_s1 + $0x38] sm:$0xff]   ;;  %3233 = vmatprep.subr.bf16.mxu1 %v3276_v0  ;;  %2897 = vmatprep.subr.bf16.mxu0 %v3276_v0  ;;  %v3279_v3 = vld [vmem:[%s3942_s1 + $0x30] sm:$0xff]   ;;  %v3281_v6 = vld [vmem:[%s3942_s1 + $0x28] sm:$0xff]   ;;  %s2690_s18 = sshll.u32 %s3953_s27, 4  ;;  %s2540_s17 = sshll.u32 %s3953_s27, 3 }
   0xe   : > { %3241 = vmatpush3.bf16.msra.mxu1 %v3277_v1  ;;  %2898 = vmatpush3.bf16.msra.mxu0 %v3277_v1  ;;  %v3282_v7 = vld [vmem:[%s3942_s1 + $0x60] sm:$0xff]   ;;  %v3284_v9 = vld [vmem:[%s3942_s1 + $0x58] sm:$0xff]   ;;  %s3531_s26 = scalar_lea.vmem %s3941_s0, %s2690_s18  ;;  %v3286_v11 = vld [vmem:[%s3942_s1 + $0x50] sm:$0xff]   ;;  %s3598_s25 = scalar_lea.vmem %s3944_s3, %s2540_s17 }
   0xf   : > { %3234 = vmatprep.subr.bf16.mxu1 %v3278_v2  ;;  %2899 = vmatprep.subr.bf16.mxu0 %v3278_v2  ;;  %v3283_v8 = vld [vmem:[%s3942_s1 + $0x20] sm:$0xff]   ;;  %v3285_v10 = vld [vmem:[%s3942_s1 + $0x18] sm:$0xff]   ;;  %v3287_v13 = vld [vmem:[%s3942_s1 + $0x10] sm:$0xff]   ;;  %s2538_s10 = sshll.u32 %s3953_s27, 2 }
  0x10   : > { %3274 = vset.pattern.permute.xlu0 %v3444_v5  ;;  %3275 = vset.pattern.permute.xlu1 %v3444_v5  ;;  %v3294_v12 = vld [vmem:[%s3531_s26 + $0x104] ss:$16 sps:$4 sm:$0xff]   ;;  %v3288_v14 = vld [vmem:[%s3942_s1 + $0x48] sm:$0xff]   ;;  %v3295_v18 = vld [vmem:[%s3942_s1 + $0xf8] sm:$0xff]   ;;  %s3748_s13 = scalar_lea.vmem %s3943_s2, %s2538_s10  ;;  %s3884_s17 = scalar_lea.vmem %s3947_s6, %s2538_s10 }
  0x11   : > { %1253 = vmatprep.mubr.bf16.mxu1 %v3294_v12  ;;  %v3289_v15 = vld [vmem:[%s3942_s1 + $0x8] sm:$0xff]   ;;  %v3290_v16 = vld [vmem:[%s3942_s1 + $0x40] sm:$0xff]   ;;  %v3296_v20 = vld [vmem:[%s3942_s1 + $0xb8] sm:$0xff]  }
  0x12   : > { %3242 = vmatpush3.bf16.msra.mxu1 %v3279_v3  ;;  %2900 = vmatpush3.bf16.msra.mxu0 %v3279_v3  ;;  %v3291_v17 = vld [vmem:[%s3942_s1] sm:$0xff]   ;;  %v3300_v22 = vld [vmem:[%s3942_s1 + $0xf0] sm:$0xff]   ;;  %v3305_v24 = vld [vmem:[%s3942_s1 + $0xe8] sm:$0xff]  }
  0x13   : > { %3235 = vmatprep.subr.bf16.mxu1 %v3280_v4  ;;  %2901 = vmatprep.subr.bf16.mxu0 %v3280_v4  ;;  %v3292_v19 = vld [vmem:[%s3531_s26 + $0x100] ss:$16 sps:$4 sm:$0xff]   ;;  %v3297_v21 = vld [vmem:[%s3531_s26 + $0x124] ss:$16 sps:$4 sm:$0xff]   ;;  %v3306_v27 = vld [vmem:[%s3942_s1 + $0xa8] sm:$0xff]  }
  0x14   : > { %v3301_v23 = vld [vmem:[%s3942_s1 + $0xb0] sm:$0xff]   ;;  %v3310_v28 = vld [vmem:[%s3942_s1 + $0xe0] sm:$0xff]   ;;  %v3315_v32 = vld [vmem:[%s3942_s1 + $0xd8] sm:$0xff]  }
  0x15   : > { %v3299_v25 = vld [vmem:[%s3531_s26 + $0x120] ss:$16 sps:$4 sm:$0xff]   ;;  %v3302_v26 = vld [vmem:[%s3531_s26 + $0x144] ss:$16 sps:$4 sm:$0xff]   ;;  %v3316_v36 = vld [vmem:[%s3942_s1 + $0x98] sm:$0xff]  }
  0x16   : > { %3243 = vmatpush3.bf16.msra.mxu1 %v3281_v6  ;;  %2902 = vmatpush3.bf16.msra.mxu0 %v3281_v6  ;;  %v3311_v29 = vld [vmem:[%s3942_s1 + $0xa0] sm:$0xff]   ;;  %v3320_v37 = vld [vmem:[%s3942_s1 + $0xd0] sm:$0xff]   ;;  %v3325_v42 = vld [vmem:[%s3942_s1 + $0xc8] sm:$0xff]  }
  0x17   : > { %3236 = vmatprep.subr.bf16.mxu1 %v3282_v7  ;;  %2903 = vmatprep.subr.bf16.mxu0 %v3282_v7  ;;  %v3332_v30 = vld [vmem:[%s3531_s26] ss:$16 sps:$4 sm:$0xff]   ;;  %v3334_v31 = vld [vmem:[%s3531_s26 + $0x4] ss:$16 sps:$4 sm:$0xff]   ;;  %v1579_v43 = vld [vmem:[%s3598_s25 + $0x8] sm:$0xff] }
  0x18   : > { %1189 = vmatprep.mubr.bf16.mxu0 %v3334_v31  ;;  %v3304_v33 = vld [vmem:[%s3531_s26 + $0x140] ss:$16 sps:$4 sm:$0xff]   ;;  %v3338_v34 = vld [vmem:[%s3531_s26 + $0x24] ss:$16 sps:$4 sm:$0xff]   ;;  %v3326_v47 = vld [vmem:[%s3942_s1 + $0x88] sm:$0xff]  }
  0x19   : > { %v3307_v35 = vld [vmem:[%s3531_s26 + $0x164] ss:$16 sps:$4 sm:$0xff]   ;;  %v3340_v39 = vld [vmem:[%s3531_s26 + $0x20] ss:$16 sps:$4 sm:$0xff]   ;;  %v1581_v49 = vld [vmem:[%s3598_s25 + $0x18] sm:$0xff] }
  0x1a   : > { %3244 = vmatpush3.bf16.msra.mxu1 %v3283_v8  ;;  %2904 = vmatpush3.bf16.msra.mxu0 %v3283_v8  ;;  %v3321_v38 = vld [vmem:[%s3942_s1 + $0x90] sm:$0xff]   ;;  %v1578_v40 = vld [vmem:[%s3598_s25] sm:$0xff]  ;;  %v1583_v54 = vld [vmem:[%s3598_s25 + $0x28] sm:$0xff] }
  0x1b   : > { %3237 = vmatprep.subr.bf16.mxu1 %v3284_v9  ;;  %2905 = vmatprep.subr.bf16.mxu0 %v3284_v9  ;;  %v3344_v41 = vld [vmem:[%s3531_s26 + $0x44] ss:$16 sps:$4 sm:$0xff]   ;;  %v3309_v45 = vld [vmem:[%s3531_s26 + $0x160] ss:$16 sps:$4 sm:$0xff]   ;;  %v1585_v58 = vld [vmem:[%s3598_s25 + $0x38] sm:$0xff] }
  0x1c   : > { %1612 = vperm.xlu0 %3274, %v1578_v40   ;;  %v1580_v44 = vld [vmem:[%s3598_s25 + $0x10] sm:$0xff]  ;;  %v3330_v48 = vld [vmem:[%s3942_s1 + $0xc0] sm:$0xff]   ;;  %v1587_v62 = vld [vmem:[%s3598_s25 + $0x48] sm:$0xff] }
  0x1d   : > { %1622 = vperm.xlu1 %3275, %v1580_v44   ;;  %v3312_v46 = vld [vmem:[%s3531_s26 + $0x184] ss:$16 sps:$4 sm:$0xff]   ;;  %v3346_v52 = vld [vmem:[%s3531_s26 + $0x40] ss:$16 sps:$4 sm:$0xff]   ;;  %v1589_v2 = vld [vmem:[%s3598_s25 + $0x58] sm:$0xff] }
  0x1e   : > { %3245 = vmatpush3.bf16.msra.mxu1 %v3285_v10  ;;  %2906 = vmatpush3.bf16.msra.mxu0 %v3285_v10  ;;  %v1582_v50 = vld [vmem:[%s3598_s25 + $0x20] sm:$0xff]  ;;  %v1584_v55 = vld [vmem:[%s3598_s25 + $0x30] sm:$0xff]  ;;  %v1591_v6 = vld [vmem:[%s3598_s25 + $0x68] sm:$0xff] }
  0x1f   : > { %3238 = vmatprep.subr.bf16.mxu1 %v3286_v11  ;;  %2907 = vmatprep.subr.bf16.mxu0 %v3286_v11  ;;  %v3331_v51 = vld [vmem:[%s3942_s1 + $0x80] sm:$0xff]   ;;  %v1588_v63 = vld [vmem:[%s3598_s25 + $0x50] sm:$0xff]  ;;  %v1593_v10 = vld [vmem:[%s3598_s25 + $0x78] sm:$0xff] }
  0x20   : > { %1617 = vperm.xlu0 %3274, %v1579_v43   ;;  %v3350_v53 = vld [vmem:[%s3531_s26 + $0x64] ss:$16 sps:$4 sm:$0xff]   ;;  %v3314_v56 = vld [vmem:[%s3531_s26 + $0x180] ss:$16 sps:$4 sm:$0xff]   ;;  %v3343_v31 = vld [vmem:[%s3531_s26 + $0x28] ss:$16 sps:$4 sm:$0xff]  }
  0x21   : > { %1627 = vperm.xlu1 %3275, %v1581_v49   ;;  %v3317_v57 = vld [vmem:[%s3531_s26 + $0x1a4] ss:$16 sps:$4 sm:$0xff]   ;;  %v3352_v60 = vld [vmem:[%s3531_s26 + $0x60] ss:$16 sps:$4 sm:$0xff]   ;;  %v3404_v40 = vld [vmem:[%s3945_s4 + $0x78] sm:$0xff]  }
  0x22   : > { %3246 = vmatpush3.bf16.msra.mxu1 %v3287_v13  ;;  %2908 = vmatpush3.bf16.msra.mxu0 %v3287_v13  ;;  %v1586_v59 = vld [vmem:[%s3598_s25 + $0x40] sm:$0xff]  ;;  %v1592_v7 = vld [vmem:[%s3598_s25 + $0x70] sm:$0xff]  ;;  %v3359_v43 = vld [vmem:[%s3531_s26 + $0x8c] ss:$16 sps:$4 sm:$0xff]  }
  0x23   : > { %3239 = vmatprep.subr.bf16.mxu1 %v3288_v14  ;;  %2909 = vmatprep.subr.bf16.mxu0 %v3288_v14  ;;  %v3356_v61 = vld [vmem:[%s3531_s26 + $0x84] ss:$16 sps:$4 sm:$0xff]   ;;  %v3319_v0 = vld [vmem:[%s3531_s26 + $0x1a0] ss:$16 sps:$4 sm:$0xff]   ;;  %v1595_v14 = vld [vmem:[%s3598_s25 + $0x88] sm:$0xff] }
  0x24   : > { %1632 = vperm.xlu0 %3274, %v1582_v50   ;;  %v3322_v1 = vld [vmem:[%s3531_s26 + $0x1c4] ss:$16 sps:$4 sm:$0xff]   ;;  %v3358_v4 = vld [vmem:[%s3531_s26 + $0x80] ss:$16 sps:$4 sm:$0xff]   ;;  %v3409_v49 = vld [vmem:[%s3945_s4 + $0x28] sm:$0xff]  }
  0x25   : > { %1637 = vperm.xlu1 %3275, %v1583_v54   ;;  %v1590_v3 = vld [vmem:[%s3598_s25 + $0x60] sm:$0xff]  ;;  %v3406_v44 = vld [vmem:[%s3945_s4 + $0x70] sm:$0xff]   ;;  %v3367_v50 = vld [vmem:[%s3531_s26 + $0xa8] ss:$16 sps:$4 sm:$0xff]  }
  0x26   : > { %3247 = vmatpush3.bf16.msra.mxu1 %v3289_v15  ;;  %2910 = vmatpush3.bf16.msra.mxu0 %v3289_v15  ;;  %v3362_v5 = vld [vmem:[%s3531_s26 + $0xa4] ss:$16 sps:$4 sm:$0xff]   ;;  %v3324_v8 = vld [vmem:[%s3531_s26 + $0x1c0] ss:$16 sps:$4 sm:$0xff]   ;;  %v3373_v54 = vld [vmem:[%s3531_s26 + $0xc8] ss:$16 sps:$4 sm:$0xff]  }
  0x27   : > { %3240 = vmatprep.subr.bf16.mxu1 %v3290_v16  ;;  %2911 = vmatprep.subr.bf16.mxu0 %v3290_v16  ;;  %v3327_v9 = vld [vmem:[%s3531_s26 + $0x1e4] ss:$16 sps:$4 sm:$0xff]   ;;  %v3364_v12 = vld [vmem:[%s3531_s26 + $0xa0] ss:$16 sps:$4 sm:$0xff]  }
  0x28   : > { %1642 = vperm.xlu0 %3274, %v1584_v55   ;;  %v1594_v11 = vld [vmem:[%s3598_s25 + $0x80] sm:$0xff]  ;;  %v1596_v16 = vld [vmem:[%s3598_s25 + $0x90] sm:$0xff]  ;;  %v3377_v55 = vld [vmem:[%s3531_s26 + $0xec] ss:$16 sps:$4 sm:$0xff]  }
  0x29   : > { %1647 = vperm.xlu1 %3275, %v1585_v58   ;;  %v3368_v13 = vld [vmem:[%s3531_s26 + $0xc4] ss:$16 sps:$4 sm:$0xff]   ;;  %v3329_v15 = vld [vmem:[%s3531_s26 + $0x1e0] ss:$16 sps:$4 sm:$0xff]   ;;  %v3379_v58 = vld [vmem:[%s3531_s26 + $0xe8] ss:$16 sps:$4 sm:$0xff]  }
  0x2a   : > { %3248 = vmatpush3.bf16.msra.mxu1 %v3291_v17  ;;  %2912 = vmatpush3.bf16.msra.mxu0 %v3291_v17  ;;  %v3337_v17 = vld [vmem:[%s3531_s26 + $0xc] ss:$16 sps:$4 sm:$0xff]  }
  0x2b   : > { %3009 = vmatprep.subr.bf16.mxu1 %v3295_v18  ;;  %v1597_v18 = vld [vmem:[%s3598_s25 + $0x98] sm:$0xff]  ;;  %3121 = vmatprep.subr.bf16.mxu0 %v3404_v40 }
  0x2c   : > { %1652 = vperm.xlu0 %3274, %v1586_v59   ;;  %v3380_v59 = vld [vmem:[%s3531_s26 + $0x10c] ss:$16 sps:$4 sm:$0xff]  }
  0x2d   : > { %1254 = vmatmul.mubr.bf16.vlgmr.msra.gmra.mxu1 %v3292_v19  ;;  %1190 = vmatmul.mubr.bf16.vlgmr.msra.gmra.mxu0 %v3332_v30  ;;  %v1598_v19 = vld [vmem:[%s3598_s25 + $0xa0] sm:$0xff]  ;;  %v1604_v30 = vld [vmem:[%s3598_s25 + $0xd0] sm:$0xff] }
  0x2e   : > { %3010 = vmatpush3.bf16.msra.mxu1 %v3296_v20  ;;  %1261 = vmatprep.mubr.bf16.mxu1 %v3297_v21  ;;  %v3370_v20 = vld [vmem:[%s3531_s26 + $0xc0] ss:$16 sps:$4 sm:$0xff]   ;;  %v3374_v21 = vld [vmem:[%s3531_s26 + $0xe4] ss:$16 sps:$4 sm:$0xff]  }
  0x2f   : > { %3011 = vmatprep.subr.bf16.mxu1 %v3300_v22  ;;  %1197 = vmatprep.mubr.bf16.mxu0 %v3338_v34  ;;  %v1599_v22 = vld [vmem:[%s3598_s25 + $0xa8] sm:$0xff]  ;;  %v1606_v34 = vld [vmem:[%s3598_s25 + $0xe0] sm:$0xff] }
  0x30   : > { %1657 = vperm.xlu1 %3275, %v1587_v62   ;;  %1662 = vperm.xlu0 %3274, %v1588_v63   ;;  %v3382_v62 = vld [vmem:[%s3531_s26 + $0x108] ss:$16 sps:$4 sm:$0xff]   ;;  %v3383_v63 = vld [vmem:[%s3531_s26 + $0x12c] ss:$16 sps:$4 sm:$0xff]  }
  0x32   : > { %3012 = vmatpush3.bf16.msra.mxu1 %v3301_v23  ;;  %v1600_v23 = vld [vmem:[%s3598_s25 + $0xb0] sm:$0xff] }
  0x33   : > { %3013 = vmatprep.subr.bf16.mxu1 %v3305_v24  ;;  %v3335_v24 = vld [vmem:[%s3531_s26 + $0x8] ss:$16 sps:$4 sm:$0xff]  }
  0x34   : > { %1667 = vperm.xlu1 %3275, %v1589_v2   ;;  %1672 = vperm.xlu0 %3274, %v1590_v3   ;;  %v3385_v2 = vld [vmem:[%s3531_s26 + $0x128] ss:$16 sps:$4 sm:$0xff]   ;;  %v3386_v3 = vld [vmem:[%s3531_s26 + $0x14c] ss:$16 sps:$4 sm:$0xff]  }
  0x35   : > { %1262 = vmatmul.mubr.bf16.gmra.mxu1 %v3299_v25  ;;  %1198 = vmatmul.mubr.bf16.gmra.mxu0 %v3340_v39  ;;  %v3341_v25 = vld [vmem:[%s3531_s26 + $0x2c] ss:$16 sps:$4 sm:$0xff]  }
  0x36   : > { %1269 = vmatprep.mubr.bf16.mxu1 %v3302_v26  ;;  %3014 = vmatpush3.bf16.msra.mxu1 %v3306_v27  ;;  %v1601_v26 = vld [vmem:[%s3598_s25 + $0xb8] sm:$0xff]  ;;  %v1602_v27 = vld [vmem:[%s3598_s25 + $0xc0] sm:$0xff] }
  0x37   : > { %3015 = vmatprep.subr.bf16.mxu1 %v3310_v28  ;;  %1205 = vmatprep.mubr.bf16.mxu0 %v3344_v41  ;;  %v3376_v28 = vld [vmem:[%s3531_s26 + $0xe0] ss:$16 sps:$4 sm:$0xff]   ;;  %v1609_v39 = vld [vmem:[%s3598_s25 + $0xf8] sm:$0xff] }
  0x38   : > { %1677 = vperm.xlu1 %3275, %v1591_v6   ;;  %1682 = vperm.xlu0 %3274, %v1592_v7   ;;  %v3405_v41 = vld [vmem:[%s3945_s4 + $0x38] sm:$0xff]  }
  0x39   : > { %3122 = vmatpush3.bf16.msra.mxu0 %v3405_v41  ;;  %v3388_v6 = vld [vmem:[%s3531_s26 + $0x148] ss:$16 sps:$4 sm:$0xff]   ;;  %v3389_v7 = vld [vmem:[%s3531_s26 + $0x16c] ss:$16 sps:$4 sm:$0xff]  }
  0x3a   : > { %3016 = vmatpush3.bf16.msra.mxu1 %v3311_v29  ;;  %v1603_v29 = vld [vmem:[%s3598_s25 + $0xc8] sm:$0xff]  ;;  %3123 = vmatprep.subr.bf16.mxu0 %v3406_v44 }
  0x3b   : > { %3017 = vmatprep.subr.bf16.mxu1 %v3315_v32  ;;  %v3347_v32 = vld [vmem:[%s3531_s26 + $0x4c] ss:$16 sps:$4 sm:$0xff]  }
  0x3c   : > { %1687 = vperm.xlu1 %3275, %v1593_v10   ;;  %1692 = vperm.xlu0 %3274, %v1594_v11   ;;  %v3392_v10 = vld [vmem:[%s3531_s26 + $0x18c] ss:$16 sps:$4 sm:$0xff]   ;;  %v3394_v11 = vld [vmem:[%s3531_s26 + $0x188] ss:$16 sps:$4 sm:$0xff]  }
  0x3d   : > { %1270 = vmatmul.mubr.bf16.gmra.mxu1 %v3304_v33  ;;  %1206 = vmatmul.mubr.bf16.gmra.mxu0 %v3346_v52  ;;  %v1605_v33 = vld [vmem:[%s3598_s25 + $0xd8] sm:$0xff]  ;;  %v3410_v52 = vld [vmem:[%s3945_s4 + $0x60] sm:$0xff]  }
  0x3e   : > { %1277 = vmatprep.mubr.bf16.mxu1 %v3307_v35  ;;  %3018 = vmatpush3.bf16.msra.mxu1 %v3316_v36  ;;  %v1607_v35 = vld [vmem:[%s3598_s25 + $0xe8] sm:$0xff]  ;;  %v1608_v36 = vld [vmem:[%s3598_s25 + $0xf0] sm:$0xff] }
  0x3f   : > { %3019 = vmatprep.subr.bf16.mxu1 %v3320_v37  ;;  %1213 = vmatprep.mubr.bf16.mxu0 %v3350_v53  ;;  %v3349_v37 = vld [vmem:[%s3531_s26 + $0x48] ss:$16 sps:$4 sm:$0xff]   ;;  %v3411_v53 = vld [vmem:[%s3945_s4 + $0x20] sm:$0xff]  }
  0x40   : > { %1697 = vperm.xlu1 %3275, %v1595_v14   ;;  %1702 = vperm.xlu0 %3274, %v1596_v16   ;;  %v3398_v14 = vld [vmem:[%s3531_s26 + $0x1cc] ss:$16 sps:$4 sm:$0xff]  }
  0x41   : > { %v3401_v16 = vld [vmem:[%s3531_s26 + $0x1ec] ss:$16 sps:$4 sm:$0xff]  }
  0x42   : > { %3020 = vmatpush3.bf16.msra.mxu1 %v3321_v38  ;;  %v3353_v38 = vld [vmem:[%s3531_s26 + $0x6c] ss:$16 sps:$4 sm:$0xff]  }
  0x43   : > { %3021 = vmatprep.subr.bf16.mxu1 %v3325_v42  ;;  %v3355_v42 = vld [vmem:[%s3531_s26 + $0x68] ss:$16 sps:$4 sm:$0xff]  }
  0x44   : > { %1707 = vperm.xlu1 %3275, %v1597_v18   ;;  %1712 = vperm.xlu0 %3274, %v1598_v19  }
  0x45   : > { %1278 = vmatmul.mubr.bf16.gmra.mxu1 %v3309_v45  ;;  %1214 = vmatmul.mubr.bf16.gmra.mxu0 %v3352_v60  ;;  %v3407_v45 = vld [vmem:[%s3945_s4 + $0x30] sm:$0xff]  }
  0x46   : > { %1285 = vmatprep.mubr.bf16.mxu1 %v3312_v46  ;;  %3022 = vmatpush3.bf16.msra.mxu1 %v3326_v47  ;;  %v3361_v46 = vld [vmem:[%s3531_s26 + $0x88] ss:$16 sps:$4 sm:$0xff]   ;;  %v3365_v47 = vld [vmem:[%s3531_s26 + $0xac] ss:$16 sps:$4 sm:$0xff]   ;;  %v3414_v60 = vld [vmem:[%s3945_s4 + $0x50] sm:$0xff]  }
  0x47   : > { %3023 = vmatprep.subr.bf16.mxu1 %v3330_v48  ;;  %1221 = vmatprep.mubr.bf16.mxu0 %v3356_v61  ;;  %v3408_v48 = vld [vmem:[%s3945_s4 + $0x68] sm:$0xff]   ;;  %v3415_v61 = vld [vmem:[%s3945_s4 + $0x10] sm:$0xff]  }
  0x48   : > { %1717 = vperm.xlu1 %3275, %v1599_v22   ;;  %1722 = vperm.xlu0 %3274, %v1600_v23  }
  0x49   : > { %3124 = vmatpush3.bf16.msra.mxu0 %v3407_v45 }
  0x4a   : > { %3024 = vmatpush3.bf16.msra.mxu1 %v3331_v51  ;;  %3125 = vmatprep.subr.bf16.mxu0 %v3408_v48  ;;  %v3371_v51 = vld [vmem:[%s3531_s26 + $0xcc] ss:$16 sps:$4 sm:$0xff]  }
  0x4c   : > { %1727 = vperm.xlu1 %3275, %v1601_v26   ;;  %1732 = vperm.xlu0 %3274, %v1602_v27  }
  0x4d   : > { %1286 = vmatmul.mubr.bf16.gmra.mxu1 %v3314_v56  ;;  %1222 = vmatmul.mubr.bf16.gmra.mxu0 %v3358_v4  ;;  %v3412_v56 = vld [vmem:[%s3945_s4 + $0x58] sm:$0xff]   ;;  %v3418_v4 = vld [vmem:[%s3945_s4 + $0x40] sm:$0xff]  }
  0x4e   : > { %1293 = vmatprep.mubr.bf16.mxu1 %v3317_v57  ;;  %1229 = vmatprep.mubr.bf16.mxu0 %v3362_v5  ;;  %v3413_v57 = vld [vmem:[%s3945_s4 + $0x18] sm:$0xff]   ;;  %v3419_v5 = vld [vmem:[%s3945_s4] sm:$0xff]  }
  0x4f   : > { %3126 = vmatpush3.bf16.msra.mxu0 %v3409_v49 }
  0x50   : > { %1737 = vperm.xlu1 %3275, %v1603_v29   ;;  %1742 = vperm.xlu0 %3274, %v1604_v30  }
  0x51   : > { %3127 = vmatprep.subr.bf16.mxu0 %v3410_v52 }
  0x53   : > { %3128 = vmatpush3.bf16.msra.mxu0 %v3411_v53 }
  0x54   : > { %1747 = vperm.xlu1 %3275, %v1605_v33   ;;  %1752 = vperm.xlu0 %3274, %v1606_v34  }
  0x55   : > { %1294 = vmatmul.mubr.bf16.gmra.mxu1 %v3319_v0  ;;  %1230 = vmatmul.mubr.bf16.gmra.mxu0 %v3364_v12  ;;  %v3416_v0 = vld [vmem:[%s3945_s4 + $0x48] sm:$0xff]  }
  0x56   : > { %1301 = vmatprep.mubr.bf16.mxu1 %v3322_v1  ;;  %1237 = vmatprep.mubr.bf16.mxu0 %v3368_v13  ;;  %v3417_v1 = vld [vmem:[%s3945_s4 + $0x8] sm:$0xff]  }
  0x57   : > { %3129 = vmatprep.subr.bf16.mxu0 %v3412_v56  ;;  %v3395_v12 = vld [vmem:[%s3531_s26 + $0x1ac] ss:$16 sps:$4 sm:$0xff]   ;;  %v3397_v13 = vld [vmem:[%s3531_s26 + $0x1a8] ss:$16 sps:$4 sm:$0xff]  }
  0x58   : > { %1757 = vperm.xlu1 %3275, %v1607_v35   ;;  %1762 = vperm.xlu0 %3274, %v1608_v36  }
  0x59   : > { %3130 = vmatpush3.bf16.msra.mxu0 %v3413_v57 }
  0x5a   : > { %3131 = vmatprep.subr.bf16.mxu0 %v3414_v60 }
  0x5c   : > { %1767 = vperm.xlu1 %3275, %v1609_v39  }
  0x5d   : > { %1302 = vmatmul.mubr.bf16.gmra.mxu1 %v3324_v8  ;;  %1238 = vmatmul.mubr.bf16.gmra.mxu0 %v3370_v20  ;;  %v2724_v8 = vld [vmem:[%s3748_s13] sm:$0xff]  }
  0x5e   : > { %1309 = vmatprep.mubr.bf16.mxu1 %v3327_v9  ;;  %1245 = vmatprep.mubr.bf16.mxu0 %v3374_v21  ;;  %v3391_v9 = vld [vmem:[%s3531_s26 + $0x168] ss:$16 sps:$4 sm:$0xff]  }
  0x5f   : > { %3132 = vmatpush3.bf16.msra.mxu0 %v3415_v61 }
  0x60   : > { %3133 = vmatprep.subr.bf16.mxu0 %v3416_v0 }
  0x63   : > { %3134 = vmatpush3.bf16.msra.mxu0 %v3417_v1 }
  0x64   : > { %3135 = vmatprep.subr.bf16.mxu0 %v3418_v4 }
  0x65   : > { %1310 = vmatmul.mubr.bf16.gmra.mxu1 %v3329_v15  ;;  %1246 = vmatmul.mubr.bf16.gmra.mxu0 %v3376_v28  ;;  %v3400_v15 = vld [vmem:[%s3531_s26 + $0x1c8] ss:$16 sps:$4 sm:$0xff]  }
  0x66   : > { %1350 = vmatprep.mubr.bf16.mxu1 %v3337_v17  ;;  %2097 = vmatprep.mubr.bf16.mxu0 %v2724_v8  ;;  %v3403_v17 = vld [vmem:[%s3531_s26 + $0x1e8] ss:$16 sps:$4 sm:$0xff]  }
  0x67   : > { %3136 = vmatpush3.bf16.msra.mxu0 %v3419_v5 }
  0x6d   : > { %1351 = vmatmul.mubr.bf16.vlgmr.msra.gmra.mxu1 %v3335_v24 }
  0x6e   : > { %1358 = vmatprep.mubr.bf16.mxu1 %v3341_v25 }
  0x75   : > { %1359 = vmatmul.mubr.bf16.gmra.mxu1 %v3343_v31 }
  0x76   : > { %1366 = vmatprep.mubr.bf16.mxu1 %v3347_v32 }
  0x7d   : > { %1367 = vmatmul.mubr.bf16.gmra.mxu1 %v3349_v37 }
  0x7e   : > { %1374 = vmatprep.mubr.bf16.mxu1 %v3353_v38 }
  0x85   : > { %1375 = vmatmul.mubr.bf16.gmra.mxu1 %v3355_v42 }
  0x86   : > { %1382 = vmatprep.mubr.bf16.mxu1 %v3359_v43 }
  0x8d   : > { %1383 = vmatmul.mubr.bf16.gmra.mxu1 %v3361_v46 }
  0x8e   : > { %1390 = vmatprep.mubr.bf16.mxu1 %v3365_v47 }
  0x95   : > { %1391 = vmatmul.mubr.bf16.gmra.mxu1 %v3367_v50 }
  0x96   : > { %1398 = vmatprep.mubr.bf16.mxu1 %v3371_v51 }
  0x9d   : > { %1399 = vmatmul.mubr.bf16.gmra.mxu1 %v3373_v54 }
  0x9e   : > { %1406 = vmatprep.mubr.bf16.mxu1 %v3377_v55 }
  0xa5   : > { %1407 = vmatmul.mubr.bf16.gmra.mxu1 %v3379_v58 }
  0xa6   : > { %1414 = vmatprep.mubr.bf16.mxu1 %v3380_v59 }
  0xad   : > { %1415 = vmatmul.mubr.bf16.gmra.mxu1 %v3382_v62 }
  0xae   : > { %1422 = vmatprep.mubr.bf16.mxu1 %v3383_v63 }
  0xb5   : > { %1423 = vmatmul.mubr.bf16.gmra.mxu1 %v3385_v2 }
  0xb6   : > { %1430 = vmatprep.mubr.bf16.mxu1 %v3386_v3 }
  0xbd   : > { %1431 = vmatmul.mubr.bf16.gmra.mxu1 %v3388_v6 }
  0xbe   : > { %1438 = vmatprep.mubr.bf16.mxu1 %v3389_v7 }
  0xc5   : > { %1439 = vmatmul.mubr.bf16.gmra.mxu1 %v3391_v9 }
  0xc6   : > { %1446 = vmatprep.mubr.bf16.mxu1 %v3392_v10 }
  0xcd   : > { %1447 = vmatmul.mubr.bf16.gmra.mxu1 %v3394_v11 }
  0xce   : > { %1454 = vmatprep.mubr.bf16.mxu1 %v3395_v12 }
  0xd5   : > { %1455 = vmatmul.mubr.bf16.gmra.mxu1 %v3397_v13 }
  0xd6   : > { %1462 = vmatprep.mubr.bf16.mxu1 %v3398_v14 }
  0xdd   : > { %1463 = vmatmul.mubr.bf16.gmra.mxu1 %v3400_v15 }
  0xde   : > { %1470 = vmatprep.mubr.bf16.mxu1 %v3401_v16 }
  0xe5   : > { %1471 = vmatmul.mubr.bf16.gmra.mxu1 %v3403_v17 }
  0xed   : > { %v2961_v18 = vpop.f32.mrf.mxu1  ;;  %v2913_v28 = vpop.f32.mrf.mxu0 }
  0xef   : > { %v2962_v19 = vpop.f32.mrf.mxu1  ;;  %v2914_v30 = vpop.f32.mrf.mxu0 }
  0xf0   : > { %v3761_v20 = vadd.f32 %v2962_v19, %v2961_v18 }
  0xf1   : > { %v2964_v21 = vpop.f32.mrf.mxu1  ;;  %v2916_v33 = vpop.f32.mrf.mxu0 }
  0xf3   : > { %v2965_v22 = vpop.f32.mrf.mxu1  ;;  %v2917_v35 = vpop.f32.mrf.mxu0 }
  0xf4   : > { %v3763_v23 = vadd.f32 %v2965_v22, %v2964_v21  ;;  %v1613_v22 = vpop.permute.xlu0 %1612 }
  0xf5   : > { %v2967_v24 = vpop.f32.mrf.mxu1  ;;  %v3771_v38 = vpop.f32.mrf.mxu0 }
  0xf7   : > { %v2968_v25 = vpop.f32.mrf.mxu1  ;;  %v3773_v40 = vpop.f32.mrf.mxu0 }
  0xf8   : > { %v3765_v26 = vadd.f32 %v2968_v25, %v2967_v24 }
  0xf9   : > { %v2970_v27 = vpop.f32.mrf.mxu1  ;;  %v3777_v43 = vpop.f32.mrf.mxu0 }
  0xfb   : > { %v2971_v29 = vpop.f32.mrf.mxu1  ;;  %v2923_v47 = vpop.f32.mrf.mxu0 }
  0xfc   : > { %v3767_v31 = vadd.f32 %v2971_v29, %v2970_v27  ;;  %v2915_v29 = vadd.f32 %v2914_v30, %v2913_v28  ;;  %v2921_v28 = vadd.f32 %v3773_v40, %v3771_v38 }
  0xfd   : > { %v2973_v32 = vpop.f32.mrf.mxu1  ;;  %v3783_v51 = vpop.f32.mrf.mxu0 }
  0xff   : > { %v2974_v34 = vpop.f32.mrf.mxu1  ;;  %v3787_v55 = vpop.f32.mrf.mxu0 }
 0x100   : > { %v3769_v36 = vadd.f32 %v2974_v34, %v2973_v32  ;;  %v2918_v34 = vadd.f32 %v2917_v35, %v2916_v33  ;;  %v2867_v33 = vld [vmem:[%s3748_s13 + $0x8] sm:$0xff]  }
 0x101   : > { %v2976_v37 = vpop.f32.mrf.mxu1  ;;  %v3791_v59 = vpop.f32.mrf.mxu0 }
 0x103   : > { %v2977_v39 = vpop.f32.mrf.mxu1  ;;  %v3795_v63 = vpop.f32.mrf.mxu0 }
 0x104   : > { %v3775_v41 = vadd.f32 %v2977_v39, %v2976_v37 }
 0x105   : > { %v2979_v42 = vpop.f32.mrf.mxu1  ;;  %v3799_v3 = vpop.f32.mrf.mxu0 }
 0x107   : > { %v2980_v44 = vpop.f32.mrf.mxu1  ;;  %v3803_v7 = vpop.f32.mrf.mxu0 }
 0x108   : > { %v3779_v45 = vadd.f32 %v2980_v44, %v2979_v42 }
 0x109   : > { %v2982_v46 = vpop.f32.mrf.mxu1  ;;  %v3807_v11 = vpop.f32.mrf.mxu0 }
 0x10b   : > { %v2983_v48 = vpop.f32.mrf.mxu1  ;;  %v3811_v15 = vpop.f32.mrf.mxu0 }
 0x10c   : > { %v3781_v49 = vadd.f32 %v2983_v48, %v2982_v46  ;;  %v1618_v48 = vpop.permute.xlu0 %1617 }
 0x10d   : > { %v2985_v50 = vpop.f32.mrf.mxu1  ;;  %v3815_v19 = vpop.f32.mrf.mxu0 }
 0x10f   : > { %v2986_v52 = vpop.f32.mrf.mxu1  ;;  %v3817_v27 = vpop.f32.mrf.mxu0 }
 0x110   : > { %v3785_v53 = vadd.f32 %v2986_v52, %v2985_v50  ;;  %v1623_v52 = vpop.permute.xlu1 %1622 }
 0x111   : > { %v2988_v54 = vpop.f32.mrf.mxu1  ;;  %v3819_v44 = vpop.f32.mrf.mxu0 }
 0x113   : > { %v2989_v56 = vpop.f32.mrf.mxu1 }
 0x114   : > { %v3789_v57 = vadd.f32 %v2989_v56, %v2988_v54 }
 0x115   : > { %v2991_v58 = vpop.f32.mrf.mxu1 }
 0x117   : > { %v2992_v60 = vpop.f32.mrf.mxu1 }
 0x118   : > { %v3793_v61 = vadd.f32 %v2992_v60, %v2991_v58 }
 0x119   : > { %v2994_v62 = vpop.f32.mrf.mxu1 }
 0x11b   : > { %v2995_v0 = vpop.f32.mrf.mxu1 }
 0x11c   : > { %v3797_v1 = vadd.f32 %v2995_v0, %v2994_v62  ;;  %v3821_v62 = vpop.f32.mrf.mxu0  ;;  %v2924_v0 = vadd.f32 %v2923_v47, %v3777_v43  ;;  %v2868_v47 = vld [vmem:[%s3748_s13 + $0x10] sm:$0xff]  }
 0x11d   : > { %v2997_v2 = vpop.f32.mrf.mxu1 }
 0x11f   : > { %v2998_v4 = vpop.f32.mrf.mxu1 }
 0x120   : > { %v3801_v5 = vadd.f32 %v2998_v4, %v2997_v2 }
 0x121   : > { %v3000_v6 = vpop.f32.mrf.mxu1 }
 0x123   : > { %v3001_v8 = vpop.f32.mrf.mxu1 }
 0x124   : > { %v3805_v9 = vadd.f32 %v3001_v8, %v3000_v6  ;;  %v3827_v8 = vpop.f32.mrf.mxu0 }
 0x125   : > { %v3003_v10 = vpop.f32.mrf.mxu1 }
 0x126   : > { %v2944_v40 = vpop.f32.mrf.mxu0 }
 0x127   : > { %v3004_v12 = vpop.f32.mrf.mxu1 }
 0x128   : > { %v3809_v13 = vadd.f32 %v3004_v12, %v3003_v10  ;;  %v1628_v12 = vpop.permute.xlu1 %1627 }
 0x129   : > { %v3006_v14 = vpop.f32.mrf.mxu1 }
 0x12b   : > { %v3007_v16 = vpop.f32.mrf.mxu1 }
 0x12c   : > { %v3813_v17 = vadd.f32 %v3007_v16, %v3006_v14 }
 0x12d   : > { %v3025_v18 = vpop.f32.mrf.mxu1 }
 0x12f   : > { %v3026_v21 = vpop.f32.mrf.mxu1 }
 0x130   : > { %v3027_v24 = vadd.f32 %v3026_v21, %v3025_v18 }
 0x131   : > { %v3028_v25 = vpop.f32.mrf.mxu1 }
 0x132   : > { %v1353_v37 = vadd.f32 %v3027_v24, %v2915_v29 }
 0x133   : > { %v3029_v32 = vpop.f32.mrf.mxu1 }
 0x134   : > { %v3030_v39 = vadd.f32 %v3029_v32, %v3028_v25  ;;  %v1770_v54 = vmul.f32 %v1613_v22, %v1353_v37  ;;  %v2927_v22 = vadd.f32 %v3787_v55, %v3783_v51  ;;  %v2930_v25 = vadd.f32 %v3795_v63, %v3791_v59  ;;  %v2946_v37 = vpop.f32.mrf.mxu0  ;;  %v2869_v63 = vld [vmem:[%s3748_s13 + $0x18] sm:$0xff]  }
 0x135   : > { %v3031_v42 = vpop.f32.mrf.mxu1 }
 0x136   : > { %v1356_v46 = vadd.f32 %v3030_v39, %v2918_v34  ;;  %v1633_v39 = vpop.permute.xlu0 %1632 }
 0x137   : > { %v3032_v50 = vpop.f32.mrf.mxu1 }
 0x138   : > { %v1771_v56 = vmul.f32 %v1618_v48, %v1356_v46  ;;  %v3033_v58 = vadd.f32 %v3032_v50, %v3031_v42  ;;  %v1638_v46 = vpop.permute.xlu1 %1637 }
 0x139   : > { %v3034_v60 = vpop.f32.mrf.mxu1 }
 0x13a   : > { %v1898_v30 = vpack.c.bf16 %v1771_v56, %v1770_v54  ;;  %v1361_v2 = vadd.f32 %v3033_v58, %v2921_v28  ;;  %v2947_v54 = vpop.f32.mrf.mxu0  ;;  %v2933_v56 = vadd.f32 %v3803_v7, %v3799_v3 }
 0x13b   : > { %v3035_v35 = vpop.f32.mrf.mxu1 }
 0x13c   : > { %v3036_v4 = vadd.f32 %v3035_v35, %v3034_v60  ;;  %2098 = vmatmul.mubr.bf16.vlgmr.msra.gmra.mxu0 %v1898_v30  ;;  %v1772_v16 = vmul.f32 %v1623_v52, %v1361_v2  ;;  %v2936_v60 = vadd.f32 %v3811_v15, %v3807_v11  ;;  %v2949_v35 = vpop.f32.mrf.mxu0  ;;  %v2870_v15 = vld [vmem:[%s3748_s13 + $0x20] sm:$0xff]  }
 0x13d   : > { %v3037_v6 = vpop.f32.mrf.mxu1  ;;  %2105 = vmatprep.mubr.bf16.mxu0 %v2867_v33 }
 0x13e   : > { %v1364_v10 = vadd.f32 %v3036_v4, %v2924_v0  ;;  %v1643_v0 = vpop.permute.xlu0 %1642  ;;  %v1648_v4 = vpop.permute.xlu1 %1647 }
 0x13f   : > { %v3038_v14 = vpop.f32.mrf.mxu1 }
 0x140   : > { %v1773_v18 = vmul.f32 %v1628_v12, %v1364_v10  ;;  %v3039_v21 = vadd.f32 %v3038_v14, %v3037_v6  ;;  %v2950_v14 = vpop.f32.mrf.mxu0 }
 0x141   : > { %v3040_v38 = vpop.f32.mrf.mxu1 }
 0x142   : > { %v1900_v43 = vpack.c.bf16 %v1773_v18, %v1772_v16  ;;  %v1369_v29 = vadd.f32 %v3039_v21, %v2927_v22  ;;  %v2939_v16 = vadd.f32 %v3817_v27, %v3815_v19  ;;  %v2942_v21 = vadd.f32 %v3821_v62, %v3819_v44  ;;  %v2871_v44 = vld [vmem:[%s3748_s13 + $0x28] sm:$0xff]  }
 0x143   : > { %v3041_v24 = vpop.f32.mrf.mxu1 }
 0x144   : > { %v3042_v32 = vadd.f32 %v3041_v24, %v3040_v38  ;;  %2106 = vmatmul.mubr.bf16.gmra.mxu0 %v1900_v43  ;;  %v1774_v50 = vmul.f32 %v1633_v39, %v1369_v29  ;;  %v1653_v24 = vpop.permute.xlu0 %1652  ;;  %v1658_v29 = vpop.permute.xlu1 %1657 }
 0x145   : > { %v3043_v34 = vpop.f32.mrf.mxu1  ;;  %2113 = vmatprep.mubr.bf16.mxu0 %v2868_v47  ;;  %v2952_v47 = vpop.f32.mrf.mxu0 }
 0x146   : > { %v1372_v42 = vadd.f32 %v3042_v32, %v2930_v25 }
 0x147   : > { %v3044_v48 = vpop.f32.mrf.mxu1 }
 0x148   : > { %v1775_v52 = vmul.f32 %v1638_v46, %v1372_v42  ;;  %v3045_v51 = vadd.f32 %v3044_v48, %v3043_v34  ;;  %v2953_v42 = vpop.f32.mrf.mxu0  ;;  %v2945_v46 = vadd.f32 %v2944_v40, %v3827_v8  ;;  %v2951_v40 = vadd.f32 %v2950_v14, %v2949_v35 }
 0x149   : > { %v3046_v55 = vpop.f32.mrf.mxu1 }
 0x14a   : > { %v1902_v59 = vpack.c.bf16 %v1775_v52, %v1774_v50  ;;  %v1377_v28 = vadd.f32 %v3045_v51, %v2933_v56  ;;  %v2948_v50 = vadd.f32 %v2947_v54, %v2946_v37  ;;  %v2955_v56 = vpop.f32.mrf.mxu0  ;;  %v2954_v54 = vadd.f32 %v2953_v42, %v2952_v47 }
 0x14b   : > { %v3047_v58 = vpop.f32.mrf.mxu1 }
 0x14c   : > { %v3048_v30 = vadd.f32 %v3047_v58, %v3046_v55  ;;  %2114 = vmatmul.mubr.bf16.gmra.mxu0 %v1902_v59  ;;  %v1776_v10 = vmul.f32 %v1643_v0, %v1377_v28  ;;  %v1663_v59 = vpop.permute.xlu0 %1662  ;;  %v1668_v58 = vpop.permute.xlu1 %1667 }
 0x14d   : > { %v3049_v33 = vpop.f32.mrf.mxu1  ;;  %2121 = vmatprep.mubr.bf16.mxu0 %v2869_v63  ;;  %v2956_v8 = vpop.f32.mrf.mxu0 }
 0x14e   : > { %v1380_v2 = vadd.f32 %v3048_v30, %v2936_v60  ;;  %v2957_v14 = vadd.f32 %v2956_v8, %v2955_v56 }
 0x14f   : > { %v3050_v6 = vpop.f32.mrf.mxu1 }
 0x150   : > { %v1777_v12 = vmul.f32 %v1648_v4, %v1380_v2  ;;  %v3051_v3 = vadd.f32 %v3050_v6, %v3049_v33  ;;  %v2872_v4 = vld [vmem:[%s3748_s13 + $0x30] sm:$0xff]  }
 0x151   : > { %v3052_v7 = vpop.f32.mrf.mxu1 }
 0x152   : > { %v1904_v11 = vpack.c.bf16 %v1777_v12, %v1776_v10  ;;  %v1385_v38 = vadd.f32 %v3051_v3, %v2939_v16  ;;  %v2958_v12 = vpop.f32.mrf.mxu0 }
 0x153   : > { %v3053_v18 = vpop.f32.mrf.mxu1 }
 0x154   : > { %v3054_v22 = vadd.f32 %v3053_v18, %v3052_v7  ;;  %2122 = vmatmul.mubr.bf16.gmra.mxu0 %v1904_v11  ;;  %v1778_v34 = vmul.f32 %v1653_v24, %v1385_v38  ;;  %v1673_v7 = vpop.permute.xlu0 %1672  ;;  %v1678_v11 = vpop.permute.xlu1 %1677  ;;  %v2873_v24 = vld [vmem:[%s3748_s13 + $0x38] sm:$0xff]  }
 0x155   : > { %v3055_v43 = vpop.f32.mrf.mxu1  ;;  %2129 = vmatprep.mubr.bf16.mxu0 %v2870_v15 }
 0x156   : > { %v1388_v25 = vadd.f32 %v3054_v22, %v2942_v21  ;;  %v2959_v22 = vpop.f32.mrf.mxu0 }
 0x157   : > { %v3056_v32 = vpop.f32.mrf.mxu1 }
 0x158   : > { %v1779_v39 = vmul.f32 %v1658_v29, %v1388_v25  ;;  %v3057_v19 = vadd.f32 %v3056_v32, %v3055_v43  ;;  %v2960_v25 = vadd.f32 %v2959_v22, %v2958_v12 }
 0x159   : > { %v3058_v27 = vpop.f32.mrf.mxu1 }
 0x15a   : > { %v1906_v48 = vpack.c.bf16 %v1779_v39, %v1778_v34  ;;  %v1393_v52 = vadd.f32 %v3057_v19, %v2945_v46  ;;  %v1683_v39 = vpop.permute.xlu0 %1682 }
 0x15b   : > { %v3059_v62 = vpop.f32.mrf.mxu1 }
 0x15c   : > { %v3060_v51 = vadd.f32 %v3059_v62, %v3058_v27  ;;  %2130 = vmatmul.mubr.bf16.gmra.mxu0 %v1906_v48  ;;  %v1780_v28 = vmul.f32 %v1663_v59, %v1393_v52  ;;  %v1688_v27 = vpop.permute.xlu1 %1687  ;;  %v2874_v52 = vld [vmem:[%s3748_s13 + $0x40] sm:$0xff]  }
 0x15d   : > { %v3061_v55 = vpop.f32.mrf.mxu1  ;;  %2137 = vmatprep.mubr.bf16.mxu0 %v2871_v44 }
 0x15e   : > { %v1396_v63 = vadd.f32 %v3060_v51, %v2948_v50 }
 0x15f   : > { %v3062_v60 = vpop.f32.mrf.mxu1 }
 0x160   : > { %v1781_v30 = vmul.f32 %v1668_v58, %v1396_v63  ;;  %v3063_v33 = vadd.f32 %v3062_v60, %v3061_v55  ;;  %v1693_v63 = vpop.permute.xlu0 %1692  ;;  %v1698_v60 = vpop.permute.xlu1 %1697 }
 0x161   : > { %v3064_v0 = vpop.f32.mrf.mxu1 }
 0x162   : > { %v1908_v2 = vpack.c.bf16 %v1781_v30, %v1780_v28  ;;  %v1401_v6 = vadd.f32 %v3063_v33, %v2951_v40 }
 0x163   : > { %v3065_v37 = vpop.f32.mrf.mxu1 }
 0x164   : > { %v3066_v10 = vadd.f32 %v3065_v37, %v3064_v0  ;;  %2138 = vmatmul.mubr.bf16.gmra.mxu0 %v1908_v2  ;;  %v1782_v18 = vmul.f32 %v1673_v7, %v1401_v6  ;;  %v2875_v2 = vld [vmem:[%s3748_s13 + $0x48] sm:$0xff]   ;;  %v1703_v6 = vpop.permute.xlu0 %1702 }
 0x165   : > { %v3067_v3 = vpop.f32.mrf.mxu1  ;;  %2145 = vmatprep.mubr.bf16.mxu0 %v2872_v4 }
 0x166   : > { %v1404_v16 = vadd.f32 %v3066_v10, %v2954_v54 }
 0x167   : > { %v3068_v15 = vpop.f32.mrf.mxu1 }
 0x168   : > { %v1783_v21 = vmul.f32 %v1678_v11, %v1404_v16  ;;  %v3069_v38 = vadd.f32 %v3068_v15, %v3067_v3 }
 0x169   : > { %v3070_v35 = vpop.f32.mrf.mxu1 }
 0x16a   : > { %v1910_v43 = vpack.c.bf16 %v1783_v21, %v1782_v18  ;;  %v1409_v29 = vadd.f32 %v3069_v38, %v2957_v14  ;;  %v2876_v18 = vld [vmem:[%s3748_s13 + $0x50] sm:$0xff]  }
 0x16b   : > { %v3071_v47 = vpop.f32.mrf.mxu1 }
 0x16c   : > { %v3072_v32 = vadd.f32 %v3071_v47, %v3070_v35  ;;  %2146 = vmatmul.mubr.bf16.gmra.mxu0 %v1910_v43  ;;  %v1784_v46 = vmul.f32 %v1683_v39, %v1409_v29  ;;  %v1713_v35 = vpop.permute.xlu0 %1712 }
 0x16d   : > { %v3073_v34 = vpop.f32.mrf.mxu1  ;;  %2153 = vmatprep.mubr.bf16.mxu0 %v2873_v24 }
 0x16e   : > { %v1412_v19 = vadd.f32 %v3072_v32, %v2960_v25 }
 0x16f   : > { %v3074_v42 = vpop.f32.mrf.mxu1 }
 0x170   : > { %v1785_v48 = vmul.f32 %v1688_v27, %v1412_v19  ;;  %v3075_v44 = vadd.f32 %v3074_v42, %v3073_v34  ;;  %v2877_v34 = vld [vmem:[%s3748_s13 + $0x58] sm:$0xff]   ;;  %v1723_v42 = vpop.permute.xlu0 %1722 }
 0x171   : > { %v3076_v62 = vpop.f32.mrf.mxu1 }
 0x172   : > { %v1912_v50 = vpack.c.bf16 %v1785_v48, %v1784_v46  ;;  %v1417_v55 = vadd.f32 %v3075_v44, %v3761_v20 }
 0x173   : > { %v3077_v51 = vpop.f32.mrf.mxu1 }
 0x174   : > { %v3078_v56 = vadd.f32 %v3077_v51, %v3076_v62  ;;  %2154 = vmatmul.mubr.bf16.gmra.mxu0 %v1912_v50  ;;  %v1786_v30 = vmul.f32 %v1693_v63, %v1417_v55  ;;  %v2878_v55 = vld [vmem:[%s3748_s13 + $0x60] sm:$0xff]  }
 0x175   : > { %v3079_v59 = vpop.f32.mrf.mxu1  ;;  %2161 = vmatprep.mubr.bf16.mxu0 %v2874_v52 }
 0x176   : > { %v1420_v58 = vadd.f32 %v3078_v56, %v3763_v23  ;;  %v1708_v23 = vpop.permute.xlu1 %1707 }
 0x177   : > { %v3080_v28 = vpop.f32.mrf.mxu1 }
 0x178   : > { %v1787_v33 = vmul.f32 %v1698_v60, %v1420_v58  ;;  %v3081_v0 = vadd.f32 %v3080_v28, %v3079_v59  ;;  %v1733_v58 = vpop.permute.xlu0 %1732 }
 0x179   : > { %v3082_v8 = vpop.f32.mrf.mxu1 }
 0x17a   : > { %v1914_v40 = vpack.c.bf16 %v1787_v33, %v1786_v30  ;;  %v1425_v37 = vadd.f32 %v3081_v0, %v3765_v26 }
 0x17b   : > { %v3083_v4 = vpop.f32.mrf.mxu1 }
 0x17c   : > { %v3084_v20 = vadd.f32 %v3083_v4, %v3082_v8  ;;  %2162 = vmatmul.mubr.bf16.gmra.mxu0 %v1914_v40  ;;  %v1788_v3 = vmul.f32 %v1703_v6, %v1425_v37 }
 0x17d   : > { %v3085_v54 = vpop.f32.mrf.mxu1  ;;  %2169 = vmatprep.mubr.bf16.mxu0 %v2875_v2  ;;  %v2879_v2 = vld [vmem:[%s3748_s13 + $0x68] sm:$0xff]  }
 0x17e   : > { %v1428_v10 = vadd.f32 %v3084_v20, %v3767_v31  ;;  %v1718_v31 = vpop.permute.xlu1 %1717 }
 0x17f   : > { %v3086_v12 = vpop.f32.mrf.mxu1 }
 0x180   : > { %v1789_v7 = vmul.f32 %v1708_v23, %v1428_v10  ;;  %v3087_v16 = vadd.f32 %v3086_v12, %v3085_v54  ;;  %v1743_v54 = vpop.permute.xlu0 %1742 }
 0x181   : > { %v3088_v11 = vpop.f32.mrf.mxu1 }
 0x182   : > { %v1916_v15 = vpack.c.bf16 %v1789_v7, %v1788_v3  ;;  %v1433_v38 = vadd.f32 %v3087_v16, %v3769_v36 }
 0x183   : > { %v3089_v21 = vpop.f32.mrf.mxu1 }
 0x184   : > { %v3090_v26 = vadd.f32 %v3089_v21, %v3088_v11  ;;  %2170 = vmatmul.mubr.bf16.gmra.mxu0 %v1916_v15  ;;  %v1790_v24 = vmul.f32 %v1713_v35, %v1433_v38  ;;  %v2880_v11 = vld [vmem:[%s3748_s13 + $0x70] sm:$0xff]   ;;  %v1753_v38 = vpop.permute.xlu0 %1752 }
 0x185   : > { %v3091_v22 = vpop.f32.mrf.mxu1  ;;  %2177 = vmatprep.mubr.bf16.mxu0 %v2876_v18 }
 0x186   : > { %v1436_v14 = vadd.f32 %v3090_v26, %v3775_v41  ;;  %v1728_v41 = vpop.permute.xlu1 %1727 }
 0x187   : > { %v3092_v43 = vpop.f32.mrf.mxu1 }
 0x188   : > { %v1791_v47 = vmul.f32 %v1718_v31, %v1436_v14  ;;  %v3093_v25 = vadd.f32 %v3092_v43, %v3091_v22 }
 0x189   : > { %v3094_v29 = vpop.f32.mrf.mxu1 }
 0x18a   : > { %v1918_v32 = vpack.c.bf16 %v1791_v47, %v1790_v24  ;;  %v1441_v19 = vadd.f32 %v3093_v25, %v3779_v45  ;;  %v2881_v47 = vld [vmem:[%s3748_s13 + $0x78] sm:$0xff]  }
 0x18b   : > { %v3095_v39 = vpop.f32.mrf.mxu1 }
 0x18c   : > { %v3096_v36 = vadd.f32 %v3095_v39, %v3094_v29  ;;  %2178 = vmatmul.mubr.bf16.gmra.mxu0 %v1918_v32  ;;  %v1792_v44 = vmul.f32 %v1723_v42, %v1441_v19 }
 0x18d   : > { %v3097_v27 = vpop.f32.mrf.mxu1  ;;  %2185 = vmatprep.mubr.bf16.mxu0 %v2877_v34  ;;  %v1763_v34 = vpop.permute.xlu0 %1762 }
 0x18e   : > { %v1444_v46 = vadd.f32 %v3096_v36, %v3781_v49  ;;  %v1738_v49 = vpop.permute.xlu1 %1737 }
 0x18f   : > { %v3098_v48 = vpop.f32.mrf.mxu1 }
 0x190   : > { %v1793_v62 = vmul.f32 %v1728_v41, %v1444_v46  ;;  %v3099_v50 = vadd.f32 %v3098_v48, %v3097_v27  ;;  %v3875_v41 = vld [vmem:[%s3946_s5] ss:$0 sm:$0xff] }
 0x191   : > { %v3100_v52 = vpop.f32.mrf.mxu1 }
 0x192   : > { %v1920_v51 = vpack.c.bf16 %v1793_v62, %v1792_v44  ;;  %v1449_v59 = vadd.f32 %v3099_v50, %v3785_v53 }
 0x193   : > { %v3101_v56 = vpop.f32.mrf.mxu1 }
 0x194   : > { %v3102_v45 = vadd.f32 %v3101_v56, %v3100_v52  ;;  %2186 = vmatmul.mubr.bf16.gmra.mxu0 %v1920_v51  ;;  %v1794_v30 = vmul.f32 %v1733_v58, %v1449_v59 }
 0x195   : > { %v3103_v63 = vpop.f32.mrf.mxu1  ;;  %2193 = vmatprep.mubr.bf16.mxu0 %v2878_v55 }
 0x196   : > { %v1452_v60 = vadd.f32 %v3102_v45, %v3789_v57  ;;  %v1748_v57 = vpop.permute.xlu1 %1747 }
 0x197   : > { %v3104_v28 = vpop.f32.mrf.mxu1 }
 0x198   : > { %v1795_v33 = vmul.f32 %v1738_v49, %v1452_v60  ;;  %v3105_v0 = vadd.f32 %v3104_v28, %v3103_v63 }
 0x199   : > { %v3106_v8 = vpop.f32.mrf.mxu1 }
 0x19a   : > { %v1922_v40 = vpack.c.bf16 %v1795_v33, %v1794_v30  ;;  %v1457_v37 = vadd.f32 %v3105_v0, %v3793_v61 }
 0x19b   : > { %v3107_v4 = vpop.f32.mrf.mxu1 }
 0x19c   : > { %v3108_v53 = vadd.f32 %v3107_v4, %v3106_v8  ;;  %2194 = vmatmul.mubr.bf16.gmra.mxu0 %v1922_v40  ;;  %v1796_v23 = vmul.f32 %v1743_v54, %v1457_v37 }
 0x19d   : > { %v3109_v20 = vpop.f32.mrf.mxu1  ;;  %2201 = vmatprep.mubr.bf16.mxu0 %v2879_v2 }
 0x19e   : > { %v1460_v6 = vadd.f32 %v3108_v53, %v3797_v1  ;;  %v1758_v1 = vpop.permute.xlu1 %1757 }
 0x19f   : > { %v3110_v10 = vpop.f32.mrf.mxu1 }
 0x1a0   : > { %v1797_v12 = vmul.f32 %v1748_v57, %v1460_v6  ;;  %v3111_v3 = vadd.f32 %v3110_v10, %v3109_v20 }
 0x1a1   : > { %v3112_v7 = vpop.f32.mrf.mxu1 }
 0x1a2   : > { %v1924_v16 = vpack.c.bf16 %v1797_v12, %v1796_v23  ;;  %v1465_v18 = vadd.f32 %v3111_v3, %v3801_v5  ;;  %v1768_v39 = vpop.permute.xlu1 %1767 }
 0x1a3   : > { %v3113_v15 = vpop.f32.mrf.mxu1 }
 0x1a4   : > { %v3114_v61 = vadd.f32 %v3113_v15, %v3112_v7  ;;  %2202 = vmatmul.mubr.bf16.gmra.mxu0 %v1924_v16  ;;  %v1798_v35 = vmul.f32 %v1753_v38, %v1465_v18 }
 0x1a5   : > { %v3115_v21 = vpop.f32.mrf.mxu1  ;;  %2209 = vmatprep.mubr.bf16.mxu0 %v2880_v11 }
 0x1a6   : > { %v1468_v26 = vadd.f32 %v3114_v61, %v3805_v9 }
 0x1a7   : > { %v3116_v22 = vpop.f32.mrf.mxu1 }
 0x1a8   : > { %v1799_v14 = vmul.f32 %v1758_v1, %v1468_v26  ;;  %v3117_v31 = vadd.f32 %v3116_v22, %v3115_v21 }
 0x1a9   : > { %v3118_v43 = vpop.f32.mrf.mxu1 }
 0x1aa   : > { %v1926_v24 = vpack.c.bf16 %v1799_v14, %v1798_v35  ;;  %v1473_v29 = vadd.f32 %v3117_v31, %v3809_v13 }
 0x1ab   : > { %v3119_v25 = vpop.f32.mrf.mxu1 }
 0x1ac   : > { %v3120_v32 = vadd.f32 %v3119_v25, %v3118_v43  ;;  %2210 = vmatmul.mubr.bf16.gmra.mxu0 %v1926_v24  ;;  %v1800_v19 = vmul.f32 %v1763_v34, %v1473_v29 }
 0x1ad   : > { %2217 = vmatprep.mubr.bf16.mxu0 %v2881_v47 }
 0x1ae   : > { %v1476_v5 = vadd.f32 %v3120_v32, %v3813_v17 }
 0x1b0   : > { %v1801_v9 = vmul.f32 %v1768_v39, %v1476_v5 }
 0x1b2   : > { %v1928_v36 = vpack.c.bf16 %v1801_v9, %v1800_v19 }
 0x1b4   : > { %2218 = vmatmul.mubr.bf16.gmra.mxu0 %v1928_v36 }
 0x1fc   : > { %v3137_v27 = vpop.f32.mrf.mxu0 }
 0x1fe   : > { %v3138_v42 = vpop.f32.mrf.mxu0 }
 0x1ff   : > { %v3139_v46 = vadd.f32 %v3138_v42, %v3137_v27 }
 0x200   : > { %v3140_v13 = vpop.f32.mrf.mxu0 }
 0x201   : > { %v2100_v44 = vadd.f32 %v3139_v46, %v3875_v41 }
 0x202   : > { %v3141_v48 = vpop.f32.mrf.mxu0 }
 0x203   : > { %v3142_v17 = vadd.f32 %v3141_v48, %v3140_v13  ;;  %v2226_v51 = vmax.f32 %v2100_v44, 0.0 }
 0x204   : > { %v3143_v62 = vpop.f32.mrf.mxu0 }
 0x205   : > { %v2103_v50 = vadd.f32 %v3142_v17, %v3875_v41 }
 0x206   : > { %v3144_v52 = vpop.f32.mrf.mxu0 }
 0x207   : > { %v2227_v55 = vmax.f32 %v2103_v50, 0.0  ;;  %v3145_v56 = vadd.f32 %v3144_v52, %v3143_v62 }
 0x208   : > { %v3146_v59 = vpop.f32.mrf.mxu0 }
 0x209   : > { %v2790_v45 = vpack.c.bf16 %v2227_v55, %v2226_v51  ;;  %v2108_v58 = vadd.f32 %v3145_v56, %v3875_v41 }
 0x20a   : > { %v3147_v63 = vpop.f32.mrf.mxu0 }
 0x20b   : > { %2791 = vst [vmem:[%s3884_s17] sm:$0xff] %v2790_v45   ;;  %v3148_v60 = vadd.f32 %v3147_v63, %v3146_v59  ;;  %v2228_v33 = vmax.f32 %v2108_v58, 0.0 }
 0x20c   : > { %v3149_v49 = vpop.f32.mrf.mxu0 }
 0x20d   : > { %v2111_v28 = vadd.f32 %v3148_v60, %v3875_v41 }
 0x20e   : > { %v3150_v30 = vpop.f32.mrf.mxu0 }
 0x20f   : > { %v2229_v0 = vmax.f32 %v2111_v28, 0.0  ;;  %v3151_v8 = vadd.f32 %v3150_v30, %v3149_v49 }
 0x210   : > { %v3152_v40 = vpop.f32.mrf.mxu0 }
 0x211   : > { %v2795_v2 = vpack.c.bf16 %v2229_v0, %v2228_v33  ;;  %v2116_v37 = vadd.f32 %v3151_v8, %v3875_v41 }
 0x212   : > { %v3153_v4 = vpop.f32.mrf.mxu0 }
 0x213   : > { %2882 = vst [vmem:[%s3884_s17 + $0x8] sm:$0xff] %v2795_v2   ;;  %v3154_v53 = vadd.f32 %v3153_v4, %v3152_v40  ;;  %v2230_v57 = vmax.f32 %v2116_v37, 0.0 }
 0x214   : > { %v3155_v20 = vpop.f32.mrf.mxu0 }
 0x215   : > { %v2119_v54 = vadd.f32 %v3154_v53, %v3875_v41 }
 0x216   : > { %v3156_v6 = vpop.f32.mrf.mxu0 }
 0x217   : > { %v2231_v10 = vmax.f32 %v2119_v54, 0.0  ;;  %v3157_v23 = vadd.f32 %v3156_v6, %v3155_v20 }
 0x218   : > { %v3158_v12 = vpop.f32.mrf.mxu0 }
 0x219   : > { %v2800_v3 = vpack.c.bf16 %v2231_v10, %v2230_v57  ;;  %v2124_v16 = vadd.f32 %v3157_v23, %v3875_v41 }
 0x21a   : > { %v3159_v7 = vpop.f32.mrf.mxu0 }
 0x21b   : > { %2883 = vst [vmem:[%s3884_s17 + $0x10] sm:$0xff] %v2800_v3   ;;  %v3160_v11 = vadd.f32 %v3159_v7, %v3158_v12  ;;  %v2232_v21 = vmax.f32 %v2124_v16, 0.0 }
 0x21c   : > { %v3161_v15 = vpop.f32.mrf.mxu0 }
 0x21d   : > { %v2127_v18 = vadd.f32 %v3160_v11, %v3875_v41 }
 0x21e   : > { %v3162_v61 = vpop.f32.mrf.mxu0 }
 0x21f   : > { %v2233_v38 = vmax.f32 %v2127_v18, 0.0  ;;  %v3163_v26 = vadd.f32 %v3162_v61, %v3161_v15 }
 0x220   : > { %v3164_v1 = vpop.f32.mrf.mxu0 }
 0x221   : > { %v2805_v22 = vpack.c.bf16 %v2233_v38, %v2232_v21  ;;  %v2132_v14 = vadd.f32 %v3163_v26, %v3875_v41 }
 0x222   : > { %v3165_v35 = vpop.f32.mrf.mxu0 }
 0x223   : > { %2884 = vst [vmem:[%s3884_s17 + $0x18] sm:$0xff] %v2805_v22   ;;  %v3166_v31 = vadd.f32 %v3165_v35, %v3164_v1  ;;  %v2234_v25 = vmax.f32 %v2132_v14, 0.0 }
 0x224   : > { %v3167_v43 = vpop.f32.mrf.mxu0 }
 0x225   : > { %v2135_v24 = vadd.f32 %v3166_v31, %v3875_v41 }
 0x226   : > { %v3168_v47 = vpop.f32.mrf.mxu0 }
 0x227   : > { %v2235_v29 = vmax.f32 %v2135_v24, 0.0  ;;  %v3169_v32 = vadd.f32 %v3168_v47, %v3167_v43 }
 0x228   : > { %v3170_v5 = vpop.f32.mrf.mxu0 }
 0x229   : > { %v2810_v34 = vpack.c.bf16 %v2235_v29, %v2234_v25  ;;  %v2140_v19 = vadd.f32 %v3169_v32, %v3875_v41 }
 0x22a   : > { %v3171_v39 = vpop.f32.mrf.mxu0 }
 0x22b   : > { %2885 = vst [vmem:[%s3884_s17 + $0x20] sm:$0xff] %v2810_v34   ;;  %v3172_v9 = vadd.f32 %v3171_v39, %v3170_v5  ;;  %v2236_v46 = vmax.f32 %v2140_v19, 0.0 }
 0x22c   : > { %v3173_v36 = vpop.f32.mrf.mxu0 }
 0x22d   : > { %v2143_v27 = vadd.f32 %v3172_v9, %v3875_v41 }
 0x22e   : > { %v3174_v42 = vpop.f32.mrf.mxu0 }
 0x22f   : > { %v2237_v13 = vmax.f32 %v2143_v27, 0.0  ;;  %v3175_v48 = vadd.f32 %v3174_v42, %v3173_v36 }
 0x230   : > { %v3176_v44 = vpop.f32.mrf.mxu0 }
 0x231   : > { %v2815_v17 = vpack.c.bf16 %v2237_v13, %v2236_v46  ;;  %v2148_v50 = vadd.f32 %v3175_v48, %v3875_v41 }
 0x232   : > { %v3177_v62 = vpop.f32.mrf.mxu0 }
 0x233   : > { %2886 = vst [vmem:[%s3884_s17 + $0x28] sm:$0xff] %v2815_v17   ;;  %v3178_v52 = vadd.f32 %v3177_v62, %v3176_v44  ;;  %v2238_v59 = vmax.f32 %v2148_v50, 0.0 }
 0x234   : > { %v3179_v51 = vpop.f32.mrf.mxu0 }
 0x235   : > { %v2151_v55 = vadd.f32 %v3178_v52, %v3875_v41 }
 0x236   : > { %v3180_v56 = vpop.f32.mrf.mxu0 }
 0x237   : > { %v2239_v45 = vmax.f32 %v2151_v55, 0.0  ;;  %v3181_v63 = vadd.f32 %v3180_v56, %v3179_v51 }
 0x238   : > { %v3182_v58 = vpop.f32.mrf.mxu0 }
 0x239   : > { %v2820_v60 = vpack.c.bf16 %v2239_v45, %v2238_v59  ;;  %v2156_v28 = vadd.f32 %v3181_v63, %v3875_v41 }
 0x23a   : > { %v3183_v49 = vpop.f32.mrf.mxu0 }
 0x23b   : > { %2887 = vst [vmem:[%s3884_s17 + $0x30] sm:$0xff] %v2820_v60   ;;  %v3184_v30 = vadd.f32 %v3183_v49, %v3182_v58  ;;  %v2240_v40 = vmax.f32 %v2156_v28, 0.0 }
 0x23c   : > { %v3185_v33 = vpop.f32.mrf.mxu0 }
 0x23d   : > { %v2159_v0 = vadd.f32 %v3184_v30, %v3875_v41 }
 0x23e   : > { %v3186_v8 = vpop.f32.mrf.mxu0 }
 0x23f   : > { %v2241_v2 = vmax.f32 %v2159_v0, 0.0  ;;  %v3187_v4 = vadd.f32 %v3186_v8, %v3185_v33 }
 0x240   : > { %v3188_v37 = vpop.f32.mrf.mxu0 }
 0x241   : > { %v2825_v53 = vpack.c.bf16 %v2241_v2, %v2240_v40  ;;  %v2164_v54 = vadd.f32 %v3187_v4, %v3875_v41 }
 0x242   : > { %v3189_v20 = vpop.f32.mrf.mxu0 }
 0x243   : > { %2888 = vst [vmem:[%s3884_s17 + $0x38] sm:$0xff] %v2825_v53   ;;  %v3190_v6 = vadd.f32 %v3189_v20, %v3188_v37  ;;  %v2242_v12 = vmax.f32 %v2164_v54, 0.0 }
 0x244   : > { %v3191_v57 = vpop.f32.mrf.mxu0 }
 0x245   : > { %v2167_v10 = vadd.f32 %v3190_v6, %v3875_v41 }
 0x246   : > { %v3192_v23 = vpop.f32.mrf.mxu0 }
 0x247   : > { %v2243_v3 = vmax.f32 %v2167_v10, 0.0  ;;  %v3193_v7 = vadd.f32 %v3192_v23, %v3191_v57 }
 0x248   : > { %v3194_v16 = vpop.f32.mrf.mxu0 }
 0x249   : > { %v2830_v11 = vpack.c.bf16 %v2243_v3, %v2242_v12  ;;  %v2172_v18 = vadd.f32 %v3193_v7, %v3875_v41 }
 0x24a   : > { %v3195_v15 = vpop.f32.mrf.mxu0 }
 0x24b   : > { %2889 = vst [vmem:[%s3884_s17 + $0x40] sm:$0xff] %v2830_v11   ;;  %v3196_v61 = vadd.f32 %v3195_v15, %v3194_v16  ;;  %v2244_v1 = vmax.f32 %v2172_v18, 0.0 }
 0x24c   : > { %v3197_v21 = vpop.f32.mrf.mxu0 }
 0x24d   : > { %v2175_v38 = vadd.f32 %v3196_v61, %v3875_v41 }
 0x24e   : > { %v3198_v26 = vpop.f32.mrf.mxu0 }
 0x24f   : > { %v2245_v22 = vmax.f32 %v2175_v38, 0.0  ;;  %v3199_v35 = vadd.f32 %v3198_v26, %v3197_v21 }
 0x250   : > { %v3200_v14 = vpop.f32.mrf.mxu0 }
 0x251   : > { %v2835_v31 = vpack.c.bf16 %v2245_v22, %v2244_v1  ;;  %v2180_v24 = vadd.f32 %v3199_v35, %v3875_v41 }
 0x252   : > { %v3201_v43 = vpop.f32.mrf.mxu0 }
 0x253   : > { %2890 = vst [vmem:[%s3884_s17 + $0x48] sm:$0xff] %v2835_v31   ;;  %v3202_v47 = vadd.f32 %v3201_v43, %v3200_v14  ;;  %v2246_v5 = vmax.f32 %v2180_v24, 0.0 }
 0x254   : > { %v3203_v25 = vpop.f32.mrf.mxu0 }
 0x255   : > { %v2183_v29 = vadd.f32 %v3202_v47, %v3875_v41 }
 0x256   : > { %v3204_v32 = vpop.f32.mrf.mxu0 }
 0x257   : > { %v2247_v34 = vmax.f32 %v2183_v29, 0.0  ;;  %v3205_v39 = vadd.f32 %v3204_v32, %v3203_v25 }
 0x258   : > { %v3206_v19 = vpop.f32.mrf.mxu0 }
 0x259   : > { %v2840_v9 = vpack.c.bf16 %v2247_v34, %v2246_v5  ;;  %v2188_v27 = vadd.f32 %v3205_v39, %v3875_v41 }
 0x25a   : > { %v3207_v36 = vpop.f32.mrf.mxu0 }
 0x25b   : > { %2891 = vst [vmem:[%s3884_s17 + $0x50] sm:$0xff] %v2840_v9   ;;  %v3208_v42 = vadd.f32 %v3207_v36, %v3206_v19  ;;  %v2248_v44 = vmax.f32 %v2188_v27, 0.0 }
 0x25c   : > { %v3209_v46 = vpop.f32.mrf.mxu0 }
 0x25d   : > { %v2191_v13 = vadd.f32 %v3208_v42, %v3875_v41 }
 0x25e   : > { %v3210_v48 = vpop.f32.mrf.mxu0 }
 0x25f   : > { %v2249_v17 = vmax.f32 %v2191_v13, 0.0  ;;  %v3211_v62 = vadd.f32 %v3210_v48, %v3209_v46 }
 0x260   : > { %v3212_v50 = vpop.f32.mrf.mxu0 }
 0x261   : > { %v2845_v52 = vpack.c.bf16 %v2249_v17, %v2248_v44  ;;  %v2196_v55 = vadd.f32 %v3211_v62, %v3875_v41 }
 0x262   : > { %v3213_v51 = vpop.f32.mrf.mxu0 }
 0x263   : > { %2892 = vst [vmem:[%s3884_s17 + $0x58] sm:$0xff] %v2845_v52   ;;  %v3214_v56 = vadd.f32 %v3213_v51, %v3212_v50  ;;  %v2250_v58 = vmax.f32 %v2196_v55, 0.0 }
 0x264   : > { %v3215_v59 = vpop.f32.mrf.mxu0 }
 0x265   : > { %v2199_v45 = vadd.f32 %v3214_v56, %v3875_v41 }
 0x266   : > { %v3216_v63 = vpop.f32.mrf.mxu0 }
 0x267   : > { %v2251_v60 = vmax.f32 %v2199_v45, 0.0  ;;  %v3217_v49 = vadd.f32 %v3216_v63, %v3215_v59 }
 0x268   : > { %v3218_v28 = vpop.f32.mrf.mxu0 }
 0x269   : > { %v2850_v30 = vpack.c.bf16 %v2251_v60, %v2250_v58  ;;  %v2204_v0 = vadd.f32 %v3217_v49, %v3875_v41 }
 0x26a   : > { %v3219_v33 = vpop.f32.mrf.mxu0 }
 0x26b   : > { %2893 = vst [vmem:[%s3884_s17 + $0x60] sm:$0xff] %v2850_v30   ;;  %v3220_v8 = vadd.f32 %v3219_v33, %v3218_v28  ;;  %v2252_v37 = vmax.f32 %v2204_v0, 0.0 }
 0x26c   : > { %v3221_v40 = vpop.f32.mrf.mxu0 }
 0x26d   : > { %v2207_v2 = vadd.f32 %v3220_v8, %v3875_v41 }
 0x26e   : > { %v3222_v4 = vpop.f32.mrf.mxu0 }
 0x26f   : > { %v2253_v53 = vmax.f32 %v2207_v2, 0.0  ;;  %v3223_v20 = vadd.f32 %v3222_v4, %v3221_v40 }
 0x270   : > { %v3224_v54 = vpop.f32.mrf.mxu0 }
 0x271   : > { %v2855_v6 = vpack.c.bf16 %v2253_v53, %v2252_v37  ;;  %v2212_v10 = vadd.f32 %v3223_v20, %v3875_v41 }
 0x272   : > { %v3225_v57 = vpop.f32.mrf.mxu0 }
 0x273   : > { %2894 = vst [vmem:[%s3884_s17 + $0x68] sm:$0xff] %v2855_v6   ;;  %v3226_v23 = vadd.f32 %v3225_v57, %v3224_v54  ;;  %v2254_v16 = vmax.f32 %v2212_v10, 0.0 }
 0x274   : > { %v3227_v12 = vpop.f32.mrf.mxu0 }
 0x275   : > { %v2215_v3 = vadd.f32 %v3226_v23, %v3875_v41 }
 0x276   : > { %v3228_v7 = vpop.f32.mrf.mxu0 }
 0x277   : > { %v2255_v11 = vmax.f32 %v2215_v3, 0.0  ;;  %v3229_v15 = vadd.f32 %v3228_v7, %v3227_v12 }
 0x278   : > { %v3230_v18 = vpop.f32.mrf.mxu0 }
 0x279   : > { %v2860_v61 = vpack.c.bf16 %v2255_v11, %v2254_v16  ;;  %v2220_v38 = vadd.f32 %v3229_v15, %v3875_v41 }
 0x27a   : > { %v3231_v21 = vpop.f32.mrf.mxu0 }
 0x27b   : > { %2895 = vst [vmem:[%s3884_s17 + $0x70] sm:$0xff] %v2860_v61   ;;  %v3232_v26 = vadd.f32 %v3231_v21, %v3230_v18  ;;  %v2256_v22 = vmax.f32 %v2220_v38, 0.0 }
 0x27d   : > { %v2223_v1 = vadd.f32 %v3232_v26, %v3875_v41 }
 0x27f   : > { %v2257_v35 = vmax.f32 %v2223_v1, 0.0 }
 0x281   : > { %v2865_v14 = vpack.c.bf16 %v2257_v35, %v2256_v22 }
 0x283   : > { %2896 = vst [vmem:[%s3884_s17 + $0x78] sm:$0xff] %v2865_v14  }
 0x284 PF: > { %s16_s23 = sadd.s32 1, %s3442_s23   ;;  %s3948_s21 = smov %s3438_s22 }
 0x285   : > { %p13_p5 = scmp.ge.s32.totalorder %s16_s23, 4   ;;  %s3949_s22 = smov %s3951_s24 }
 0x287   :  { %15 = sbr.rel (!%p13_p5) target bundleno = 2 (0x2), region = 91 }

</bundles_post_ra>
